<compile_context>
chip_gen: v5e
topology: v5e:2x2
jax: 0.10.0
libtpu: 0.0.40
codegen_flags: <defaults>
</compile_context>

<pallas_src>
import functools

import jax
import jax.numpy as jnp
from jax import lax
from jax.experimental import pallas as pl
from jax.experimental.pallas import tpu as pltpu

# ----------------------------- config ---------------------------------------
VOCAB_SIZE = 32          # len(vocabulary)
PAD, BOS, EOS = 0, 1, 2  # vocabulary.pad / bos / eos
EMB_SIZE = 32            # config.embedding_size
DEC_HIDDEN = 32          # config.decoder_hidden_size
DEC_LAYERS = 2           # config.decoder_num_layers
LATENT = 16              # config.latent_size
N_BATCH = 8
MAX_LEN = 8
VPAD = 128               # vocab padded to one full 128-lane vreg

_VMEM = pl.BlockSpec(memory_space=pltpu.MemorySpace.VMEM)


# --------------------------- fused decode kernel ------------------------------
def _decode_kernel(z_ref, gumbel_ref, w_l2h_ref, b_l2h_ref,
                   w0_ref, b0_ref, w1_ref, b1_ref,
                   wout_ref, bout_ref,
                   tokens_ref, lengths_ref):
    B = z_ref.shape[0]
    H = b_l2h_ref.shape[1]
    V = w0_ref.shape[0] - H          # stacked layer-0 weight has V + H rows
    VP = wout_ref.shape[1]
    max_len = tokens_ref.shape[1]

    # Weights resident for the whole decode (model < 100 KB), bf16 for the MXU.
    w_l2h = w_l2h_ref[...]
    w0, w1, wout = w0_ref[...], w1_ref[...], wout_ref[...]

    # Bias broadcasts hoisted out of the unrolled loop (f32 for the adds).
    b_l2h = jnp.broadcast_to(b_l2h_ref[...], (B, H))
    b0 = jnp.broadcast_to(b0_ref[...], (B, 4 * H))
    b1 = jnp.broadcast_to(b1_ref[...], (B, 4 * H))
    bout = jnp.broadcast_to(bout_ref[...], (B, VP))

    # is_latent_states=True path: h0 = c0 = relu(latent2hidden(z)), both layers.
    hinit = jnp.maximum(
        jnp.dot(z_ref[...].astype(jnp.bfloat16), w_l2h,
                preferred_element_type=jnp.float32) + b_l2h, 0.0)

    def lstm_update(gates, c):
        # PyTorch gate order (i, f, g, o).  Activate the dense [B, 4H] = [8, 128]
        # vreg once per nonlinearity, then take 32-lane slices.
        sg = jax.nn.sigmoid(gates)
        th = jnp.tanh(gates)
        i, f, o = sg[:, 0:H], sg[:, H:2 * H], sg[:, 3 * H:4 * H]
        g = th[:, 2 * H:3 * H]
        c_new = f * c + i * g
        return o * jnp.tanh(c_new), c_new

    h_0 = c_0 = hinit
    h_1 = c_1 = hinit
    prevs = jnp.full((B, 1), BOS, dtype=jnp.int32)
    is_end = jnp.zeros((B, 1), dtype=jnp.int32)
    lengths = jnp.zeros((B, 1), dtype=jnp.int32)
    tokens = jnp.zeros((B, max_len), dtype=jnp.int32)

    vocab_iota = lax.broadcasted_iota(jnp.int32, (B, V), 1)
    lane_iota = lax.broadcasted_iota(jnp.int32, (B, VP), 1)
    step_iota = lax.broadcasted_iota(jnp.int32, (B, max_len), 1)

    # Fully unrolled decode loop: all state stays in vregs between steps.
    for step in range(max_len):
        onehot = (vocab_iota == prevs).astype(jnp.float32)             # [B, V]

        # Layer 0: embedding lookup folded into the input projection; input and
        # hidden matmuls fused into ONE MXU pass via the stacked [V+H, 4H] weight.
        x0 = jnp.concatenate([onehot, h_0], axis=1).astype(jnp.bfloat16)   # [B, V+H]
        gates0 = jnp.dot(x0, w0, preferred_element_type=jnp.float32) + b0
        h_0, c_0 = lstm_update(gates0, c_0)

        # Layer 1: same fusion with the stacked [2H, 4H] weight.
        x1 = jnp.concatenate([h_0, h_1], axis=1).astype(jnp.bfloat16)      # [B, 2H]
        gates1 = jnp.dot(x1, w1, preferred_element_type=jnp.float32) + b1
        h_1, c_1 = lstm_update(gates1, c_1)

        # Lane-dense logits [B, 128]; padded vocab columns carry a -1e30 bias.
        logits = jnp.dot(h_1.astype(jnp.bfloat16), wout,
                         preferred_element_type=jnp.float32) + bout

        # Categorical(softmax(logits)) via Gumbel-max; noise precomputed outside
        # the kernel for all steps, loaded per step (vld slots have slack).
        scores = logits + gumbel_ref[step]
        m = jnp.max(scores, axis=-1, keepdims=True)
        currents = jnp.min(jnp.where(scores >= m, lane_iota, VP),
                           axis=-1, keepdims=True)                     # [B, 1] argmax

        # EOS / PAD bookkeeping (same convention as the PyTorch reference:
        # the EOS step itself is masked to PAD and not counted in lengths).
        is_end = jnp.maximum(is_end, (currents == EOS).astype(jnp.int32))
        currents = jnp.where(is_end > 0, PAD, currents)
        lengths = lengths + (1 - is_end)
        tokens = jnp.where(step_iota == step, currents, tokens)
        prevs = currents

    tokens_ref[...] = tokens
    lengths_ref[...] = lengths


# --------------------------- parameter init ----------------------------------
def init_params(key):
    ks = jax.random.split(key, 6)
    scale = 0.1
    emb = scale * jax.random.normal(ks[0], (VOCAB_SIZE, EMB_SIZE), jnp.float32)
    emb = emb.at[PAD].set(0.0)                      # padding_idx -> zero row
    params = {
        "embedding": emb,
        # Decoder.latent2hidden_layer : Linear(latent, hidden)   [in, out]
        "w_l2h": scale * jax.random.normal(ks[1], (LATENT, DEC_HIDDEN), jnp.float32),
        "b_l2h": scale * jax.random.normal(ks[2], (1, DEC_HIDDEN), jnp.float32),
        # Decoder.linear_layer : Linear(hidden, vocab)            [in, out]
        "w_out": scale * jax.random.normal(ks[3], (DEC_HIDDEN, VOCAB_SIZE), jnp.float32),
        "b_out": scale * jax.random.normal(ks[4], (1, VOCAB_SIZE), jnp.float32),
        "wih": [], "whh": [], "bias": [],
    }
    # Decoder.lstm_layer : LSTM(EMB_SIZE, DEC_HIDDEN, DEC_LAYERS, batch_first=True)
    lk = jax.random.split(ks[5], DEC_LAYERS * 3)
    for l in range(DEC_LAYERS):
        in_dim = EMB_SIZE if l == 0 else DEC_HIDDEN
        params["wih"].append(
            scale * jax.random.normal(lk[3 * l + 0], (in_dim, 4 * DEC_HIDDEN), jnp.float32))
        params["whh"].append(
            scale * jax.random.normal(lk[3 * l + 1], (DEC_HIDDEN, 4 * DEC_HIDDEN), jnp.float32))
        # bias = bias_ih + bias_hh (pre-summed)
        params["bias"].append(
            scale * jax.random.normal(lk[3 * l + 2], (1, 4 * DEC_HIDDEN), jnp.float32))
    return params


def prepare_params(params):
    """One-time weight derivation, kept OUT of the per-call jitted sample() path."""
    # Fold the embedding table into the layer-0 input projection:
    #   embedding(prev) @ W_ih0  ==  onehot(prev) @ (embedding @ W_ih0)
    emb_wih0 = jnp.dot(params["embedding"], params["wih"][0])            # [V, 4H]
    # Stack input + hidden weights so each LSTM layer is ONE matmul per step.
    w0 = jnp.concatenate([emb_wih0, params["whh"][0]], axis=0)           # [V+H, 4H] = [64,128]
    w1 = jnp.concatenate([params["wih"][1], params["whh"][1]], axis=0)   # [2H, 4H]  = [64,128]
    # Lane-dense vocab projection: pad V=32 -> 128; padded cols can never be sampled.
    w_out = jnp.zeros((DEC_HIDDEN, VPAD), jnp.float32).at[:, :VOCAB_SIZE].set(params["w_out"])
    b_out = jnp.full((1, VPAD), -1e30, jnp.float32).at[:, :VOCAB_SIZE].set(params["b_out"])
    return {
        "w_l2h": params["w_l2h"].astype(jnp.bfloat16),
        "b_l2h": params["b_l2h"],
        "w0": w0.astype(jnp.bfloat16), "b0": params["bias"][0],
        "w1": w1.astype(jnp.bfloat16), "b1": params["bias"][1],
        "w_out": w_out.astype(jnp.bfloat16), "b_out": b_out,
    }


# ----------------------------- sample() --------------------------------------
@functools.partial(jax.jit, static_argnames=("n_batch", "max_len"))
def sample(prep, key, n_batch=N_BATCH, max_len=MAX_LEN):
    """Mirrors AutoEncoder.sample(): returns (token ids [B, max_len], lengths [B])."""
    key_z, key_g = jax.random.split(key)
    z = jax.random.normal(key_z, (n_batch, LATENT), jnp.float32)          # sample_latent
    # Gumbel noise for ALL steps, precomputed (data-independent) -> off the serial
    # per-step chain and no in-kernel hardware-PRNG primitives needed.
    gumbel = jax.random.gumbel(key_g, (max_len, n_batch, VPAD), jnp.float32)

    tokens, lengths = pl.pallas_call(
        _decode_kernel,
        out_shape=(jax.ShapeDtypeStruct((n_batch, max_len), jnp.int32),
                   jax.ShapeDtypeStruct((n_batch, 1), jnp.int32)),
        in_specs=[_VMEM] * 10,
        out_specs=(_VMEM, _VMEM),
    )(z, gumbel, prep["w_l2h"], prep["b_l2h"],
      prep["w0"], prep["b0"], prep["w1"], prep["b1"],
      prep["w_out"], prep["b_out"])
    return tokens, lengths[:, 0]


# ------------------------------- main -----------------------------------------
if __name__ == "__main__":
    root = jax.random.PRNGKey(0)
    pkey, skey = jax.random.split(root)
    params = init_params(pkey)
    prep = prepare_params(params)          # one-time, outside the per-call path

    tokens, lengths = sample(prep, skey, n_batch=N_BATCH, max_len=MAX_LEN)
    tokens = jax.block_until_ready(tokens)
    lengths = jax.block_until_ready(lengths)

    assert tokens.shape == (N_BATCH, MAX_LEN)
    assert lengths.shape == (N_BATCH,)
    assert bool(jnp.all((tokens >= 0) & (tokens < VOCAB_SIZE)))
    assert bool(jnp.all((lengths >= 0) & (lengths <= MAX_LEN)))
    print("KERNEL_OK")
</pallas_src>

<mosaic_0001>
module attributes {stable_mosaic.version = 11 : i64} {
  func.func @_decode_kernel(%arg0: memref<8x16xf32, #tpu.memory_space<vmem>>, %arg1: memref<8x8x128xf32, #tpu.memory_space<vmem>>, %arg2: memref<16x32xbf16, #tpu.memory_space<vmem>>, %arg3: memref<1x32xf32, #tpu.memory_space<vmem>>, %arg4: memref<64x128xbf16, #tpu.memory_space<vmem>>, %arg5: memref<1x128xf32, #tpu.memory_space<vmem>>, %arg6: memref<64x128xbf16, #tpu.memory_space<vmem>>, %arg7: memref<1x128xf32, #tpu.memory_space<vmem>>, %arg8: memref<32x128xbf16, #tpu.memory_space<vmem>>, %arg9: memref<1x128xf32, #tpu.memory_space<vmem>>, %arg10: memref<8x8xi32, #tpu.memory_space<vmem>>, %arg11: memref<8x1xi32, #tpu.memory_space<vmem>>) attributes {dimension_semantics = [], scalar_prefetch = 0 : i64, scratch_operands = 0 : i64, tpu.core_type = #tpu.core_type<tc>} {
    %c0 = arith.constant 0 : index
    %c0_0 = arith.constant 0 : index
    %0 = vector.load %arg2[%c0, %c0_0] : memref<16x32xbf16, #tpu.memory_space<vmem>>, vector<16x32xbf16>
    %c0_1 = arith.constant 0 : index
    %c0_2 = arith.constant 0 : index
    %1 = vector.load %arg4[%c0_1, %c0_2] : memref<64x128xbf16, #tpu.memory_space<vmem>>, vector<64x128xbf16>
    %c0_3 = arith.constant 0 : index
    %c0_4 = arith.constant 0 : index
    %2 = vector.load %arg6[%c0_3, %c0_4] : memref<64x128xbf16, #tpu.memory_space<vmem>>, vector<64x128xbf16>
    %c0_5 = arith.constant 0 : index
    %c0_6 = arith.constant 0 : index
    %3 = vector.load %arg8[%c0_5, %c0_6] : memref<32x128xbf16, #tpu.memory_space<vmem>>, vector<32x128xbf16>
    %c0_7 = arith.constant 0 : index
    %c0_8 = arith.constant 0 : index
    %4 = vector.load %arg3[%c0_7, %c0_8] : memref<1x32xf32, #tpu.memory_space<vmem>>, vector<1x32xf32>
    %5 = vector.shape_cast %4 : vector<1x32xf32> to vector<1x32xf32>
    %6 = vector.broadcast %5 : vector<1x32xf32> to vector<8x32xf32>
    %c0_9 = arith.constant 0 : index
    %c0_10 = arith.constant 0 : index
    %7 = vector.load %arg5[%c0_9, %c0_10] : memref<1x128xf32, #tpu.memory_space<vmem>>, vector<1x128xf32>
    %8 = vector.shape_cast %7 : vector<1x128xf32> to vector<1x128xf32>
    %9 = vector.broadcast %8 : vector<1x128xf32> to vector<8x128xf32>
    %c0_11 = arith.constant 0 : index
    %c0_12 = arith.constant 0 : index
    %10 = vector.load %arg7[%c0_11, %c0_12] : memref<1x128xf32, #tpu.memory_space<vmem>>, vector<1x128xf32>
    %11 = vector.shape_cast %10 : vector<1x128xf32> to vector<1x128xf32>
    %12 = vector.broadcast %11 : vector<1x128xf32> to vector<8x128xf32>
    %c0_13 = arith.constant 0 : index
    %c0_14 = arith.constant 0 : index
    %13 = vector.load %arg9[%c0_13, %c0_14] : memref<1x128xf32, #tpu.memory_space<vmem>>, vector<1x128xf32>
    %14 = vector.shape_cast %13 : vector<1x128xf32> to vector<1x128xf32>
    %15 = vector.broadcast %14 : vector<1x128xf32> to vector<8x128xf32>
    %c0_15 = arith.constant 0 : index
    %c0_16 = arith.constant 0 : index
    %16 = vector.load %arg0[%c0_15, %c0_16] : memref<8x16xf32, #tpu.memory_space<vmem>>, vector<8x16xf32>
    %17 = arith.truncf %16 : vector<8x16xf32> to vector<8x16xbf16>
    %cst = arith.constant dense<0.000000e+00> : vector<8x32xf32>
    %18 = tpu.matmul %17, %0, %cst {dimension_numbers = #tpu.dot_dimension_numbers<[1], [0], [0], [1], [0, 0, 1, 1], [], []>} : vector<8x16xbf16>, vector<16x32xbf16>, vector<8x32xf32> -> vector<8x32xf32>
    %19 = arith.addf %18, %6 : vector<8x32xf32>
    %cst_17 = arith.constant 0.000000e+00 : f32
    %20 = vector.broadcast %cst_17 : f32 to vector<8x32xf32>
    %21 = arith.maximumf %19, %20 : vector<8x32xf32>
    %c1_i32 = arith.constant 1 : i32
    %22 = vector.broadcast %c1_i32 : i32 to vector<8x1xi32>
    %c0_i32 = arith.constant 0 : i32
    %23 = vector.broadcast %c0_i32 : i32 to vector<8x1xi32>
    %c0_i32_18 = arith.constant 0 : i32
    %24 = vector.broadcast %c0_i32_18 : i32 to vector<8x1xi32>
    %c0_i32_19 = arith.constant 0 : i32
    %25 = vector.broadcast %c0_i32_19 : i32 to vector<8x8xi32>
    %26 = tpu.iota {dimensions = array<i32: 1>} : vector<8x32xi32>
    %27 = tpu.iota {dimensions = array<i32: 1>} : vector<8x128xi32>
    %28 = tpu.iota {dimensions = array<i32: 1>} : vector<8x8xi32>
    %29 = vector.broadcast %22 : vector<8x1xi32> to vector<8x32xi32>
    %30 = arith.cmpi eq, %26, %29 : vector<8x32xi32>
    %31 = arith.extui %30 : vector<8x32xi1> to vector<8x32xi32>
    %32 = arith.sitofp %31 : vector<8x32xi32> to vector<8x32xf32>
    %33 = tpu.concatenate %32, %21 in 1 : vector<8x32xf32>, vector<8x32xf32> -> vector<8x64xf32>
    %34 = arith.truncf %33 : vector<8x64xf32> to vector<8x64xbf16>
    %cst_20 = arith.constant dense<0.000000e+00> : vector<8x128xf32>
    %35 = tpu.matmul %34, %1, %cst_20 {dimension_numbers = #tpu.dot_dimension_numbers<[1], [0], [0], [1], [0, 0, 1, 1], [], []>} : vector<8x64xbf16>, vector<64x128xbf16>, vector<8x128xf32> -> vector<8x128xf32>
    %36 = arith.addf %35, %9 : vector<8x128xf32>
    %37 = arith.negf %36 : vector<8x128xf32>
    %38 = math.exp %37 : vector<8x128xf32>
    %cst_21 = arith.constant 1.000000e+00 : f32
    %39 = vector.broadcast %cst_21 : f32 to vector<8x128xf32>
    %40 = arith.addf %39, %38 : vector<8x128xf32>
    %41 = arith.divf %39, %40 : vector<8x128xf32>
    %42 = math.tanh %36 : vector<8x128xf32>
    %43 = vector.extract_strided_slice %41 {offsets = [0, 0], sizes = [8, 32], strides = [1, 1]} : vector<8x128xf32> to vector<8x32xf32>
    %44 = vector.extract_strided_slice %41 {offsets = [0, 32], sizes = [8, 32], strides = [1, 1]} : vector<8x128xf32> to vector<8x32xf32>
    %45 = vector.extract_strided_slice %41 {offsets = [0, 96], sizes = [8, 32], strides = [1, 1]} : vector<8x128xf32> to vector<8x32xf32>
    %46 = vector.extract_strided_slice %42 {offsets = [0, 64], sizes = [8, 32], strides = [1, 1]} : vector<8x128xf32> to vector<8x32xf32>
    %47 = arith.mulf %44, %21 : vector<8x32xf32>
    %48 = arith.mulf %43, %46 : vector<8x32xf32>
    %49 = arith.addf %47, %48 : vector<8x32xf32>
    %50 = math.tanh %49 : vector<8x32xf32>
    %51 = arith.mulf %45, %50 : vector<8x32xf32>
    %52 = tpu.concatenate %51, %21 in 1 : vector<8x32xf32>, vector<8x32xf32> -> vector<8x64xf32>
    %53 = arith.truncf %52 : vector<8x64xf32> to vector<8x64xbf16>
    %cst_22 = arith.constant dense<0.000000e+00> : vector<8x128xf32>
    %54 = tpu.matmul %53, %2, %cst_22 {dimension_numbers = #tpu.dot_dimension_numbers<[1], [0], [0], [1], [0, 0, 1, 1], [], []>} : vector<8x64xbf16>, vector<64x128xbf16>, vector<8x128xf32> -> vector<8x128xf32>
    %55 = arith.addf %54, %12 : vector<8x128xf32>
    %56 = arith.negf %55 : vector<8x128xf32>
    %57 = math.exp %56 : vector<8x128xf32>
    %cst_23 = arith.constant 1.000000e+00 : f32
    %58 = vector.broadcast %cst_23 : f32 to vector<8x128xf32>
    %59 = arith.addf %58, %57 : vector<8x128xf32>
    %60 = arith.divf %58, %59 : vector<8x128xf32>
    %61 = math.tanh %55 : vector<8x128xf32>
    %62 = vector.extract_strided_slice %60 {offsets = [0, 0], sizes = [8, 32], strides = [1, 1]} : vector<8x128xf32> to vector<8x32xf32>
    %63 = vector.extract_strided_slice %60 {offsets = [0, 32], sizes = [8, 32], strides = [1, 1]} : vector<8x128xf32> to vector<8x32xf32>
    %64 = vector.extract_strided_slice %60 {offsets = [0, 96], sizes = [8, 32], strides = [1, 1]} : vector<8x128xf32> to vector<8x32xf32>
    %65 = vector.extract_strided_slice %61 {offsets = [0, 64], sizes = [8, 32], strides = [1, 1]} : vector<8x128xf32> to vector<8x32xf32>
    %66 = arith.mulf %63, %21 : vector<8x32xf32>
    %67 = arith.mulf %62, %65 : vector<8x32xf32>
    %68 = arith.addf %66, %67 : vector<8x32xf32>
    %69 = math.tanh %68 : vector<8x32xf32>
    %70 = arith.mulf %64, %69 : vector<8x32xf32>
    %71 = arith.truncf %70 : vector<8x32xf32> to vector<8x32xbf16>
    %cst_24 = arith.constant dense<0.000000e+00> : vector<8x128xf32>
    %72 = tpu.matmul %71, %3, %cst_24 {dimension_numbers = #tpu.dot_dimension_numbers<[1], [0], [0], [1], [0, 0, 1, 1], [], []>} : vector<8x32xbf16>, vector<32x128xbf16>, vector<8x128xf32> -> vector<8x128xf32>
    %73 = arith.addf %72, %15 : vector<8x128xf32>
    %c0_25 = arith.constant 0 : index
    %c0_26 = arith.constant 0 : index
    %c0_27 = arith.constant 0 : index
    %74 = vector.load %arg1[%c0_25, %c0_26, %c0_27] : memref<8x8x128xf32, #tpu.memory_space<vmem>>, vector<1x8x128xf32>
    %75 = vector.shape_cast %74 : vector<1x8x128xf32> to vector<8x128xf32>
    %76 = arith.addf %73, %75 : vector<8x128xf32>
    %cst_28 = arith.constant dense<0xFF800000> : vector<8xf32>
    %77 = vector.multi_reduction <maximumf>, %76, %cst_28 [1] : vector<8x128xf32> to vector<8xf32>
    %78 = vector.shape_cast %77 : vector<8xf32> to vector<8x1xf32>
    %79 = vector.broadcast %78 : vector<8x1xf32> to vector<8x128xf32>
    %80 = arith.cmpf oge, %76, %79 : vector<8x128xf32>
    %c128_i32 = arith.constant 128 : i32
    %81 = vector.broadcast %c128_i32 : i32 to vector<8x128xi32>
    %82 = arith.select %80, %27, %81 : vector<8x128xi1>, vector<8x128xi32>
    %cst_29 = arith.constant dense<2147483647> : vector<8xi32>
    %83 = vector.multi_reduction <minsi>, %82, %cst_29 [1] : vector<8x128xi32> to vector<8xi32>
    %84 = vector.shape_cast %83 : vector<8xi32> to vector<8x1xi32>
    %c2_i32 = arith.constant 2 : i32
    %85 = vector.broadcast %c2_i32 : i32 to vector<8x1xi32>
    %86 = arith.cmpi eq, %84, %85 : vector<8x1xi32>
    %87 = arith.extui %86 : vector<8x1xi1> to vector<8x1xi32>
    %88 = arith.maxsi %23, %87 : vector<8x1xi32>
    %c0_i32_30 = arith.constant 0 : i32
    %89 = vector.broadcast %c0_i32_30 : i32 to vector<8x1xi32>
    %90 = arith.cmpi sgt, %88, %89 : vector<8x1xi32>
    %c0_i32_31 = arith.constant 0 : i32
    %91 = vector.broadcast %c0_i32_31 : i32 to vector<8x1xi32>
    %92 = arith.select %90, %91, %84 : vector<8x1xi1>, vector<8x1xi32>
    %c1_i32_32 = arith.constant 1 : i32
    %93 = vector.broadcast %c1_i32_32 : i32 to vector<8x1xi32>
    %94 = arith.subi %93, %88 : vector<8x1xi32>
    %95 = arith.addi %24, %94 : vector<8x1xi32>
    %c0_i32_33 = arith.constant 0 : i32
    %96 = vector.broadcast %c0_i32_33 : i32 to vector<8x8xi32>
    %97 = arith.cmpi eq, %28, %96 : vector<8x8xi32>
    %98 = vector.shape_cast %92 : vector<8x1xi32> to vector<8x1xi32>
    %99 = vector.broadcast %98 : vector<8x1xi32> to vector<8x8xi32>
    %100 = arith.select %97, %99, %25 : vector<8x8xi1>, vector<8x8xi32>
    %101 = vector.broadcast %92 : vector<8x1xi32> to vector<8x32xi32>
    %102 = arith.cmpi eq, %26, %101 : vector<8x32xi32>
    %103 = arith.extui %102 : vector<8x32xi1> to vector<8x32xi32>
    %104 = arith.sitofp %103 : vector<8x32xi32> to vector<8x32xf32>
    %105 = tpu.concatenate %104, %51 in 1 : vector<8x32xf32>, vector<8x32xf32> -> vector<8x64xf32>
    %106 = arith.truncf %105 : vector<8x64xf32> to vector<8x64xbf16>
    %cst_34 = arith.constant dense<0.000000e+00> : vector<8x128xf32>
    %107 = tpu.matmul %106, %1, %cst_34 {dimension_numbers = #tpu.dot_dimension_numbers<[1], [0], [0], [1], [0, 0, 1, 1], [], []>} : vector<8x64xbf16>, vector<64x128xbf16>, vector<8x128xf32> -> vector<8x128xf32>
    %108 = arith.addf %107, %9 : vector<8x128xf32>
    %109 = arith.negf %108 : vector<8x128xf32>
    %110 = math.exp %109 : vector<8x128xf32>
    %cst_35 = arith.constant 1.000000e+00 : f32
    %111 = vector.broadcast %cst_35 : f32 to vector<8x128xf32>
    %112 = arith.addf %111, %110 : vector<8x128xf32>
    %113 = arith.divf %111, %112 : vector<8x128xf32>
    %114 = math.tanh %108 : vector<8x128xf32>
    %115 = vector.extract_strided_slice %113 {offsets = [0, 0], sizes = [8, 32], strides = [1, 1]} : vector<8x128xf32> to vector<8x32xf32>
    %116 = vector.extract_strided_slice %113 {offsets = [0, 32], sizes = [8, 32], strides = [1, 1]} : vector<8x128xf32> to vector<8x32xf32>
    %117 = vector.extract_strided_slice %113 {offsets = [0, 96], sizes = [8, 32], strides = [1, 1]} : vector<8x128xf32> to vector<8x32xf32>
    %118 = vector.extract_strided_slice %114 {offsets = [0, 64], sizes = [8, 32], strides = [1, 1]} : vector<8x128xf32> to vector<8x32xf32>
    %119 = arith.mulf %116, %49 : vector<8x32xf32>
    %120 = arith.mulf %115, %118 : vector<8x32xf32>
    %121 = arith.addf %119, %120 : vector<8x32xf32>
    %122 = math.tanh %121 : vector<8x32xf32>
    %123 = arith.mulf %117, %122 : vector<8x32xf32>
    %124 = tpu.concatenate %123, %70 in 1 : vector<8x32xf32>, vector<8x32xf32> -> vector<8x64xf32>
    %125 = arith.truncf %124 : vector<8x64xf32> to vector<8x64xbf16>
    %cst_36 = arith.constant dense<0.000000e+00> : vector<8x128xf32>
    %126 = tpu.matmul %125, %2, %cst_36 {dimension_numbers = #tpu.dot_dimension_numbers<[1], [0], [0], [1], [0, 0, 1, 1], [], []>} : vector<8x64xbf16>, vector<64x128xbf16>, vector<8x128xf32> -> vector<8x128xf32>
    %127 = arith.addf %126, %12 : vector<8x128xf32>
    %128 = arith.negf %127 : vector<8x128xf32>
    %129 = math.exp %128 : vector<8x128xf32>
    %cst_37 = arith.constant 1.000000e+00 : f32
    %130 = vector.broadcast %cst_37 : f32 to vector<8x128xf32>
    %131 = arith.addf %130, %129 : vector<8x128xf32>
    %132 = arith.divf %130, %131 : vector<8x128xf32>
    %133 = math.tanh %127 : vector<8x128xf32>
    %134 = vector.extract_strided_slice %132 {offsets = [0, 0], sizes = [8, 32], strides = [1, 1]} : vector<8x128xf32> to vector<8x32xf32>
    %135 = vector.extract_strided_slice %132 {offsets = [0, 32], sizes = [8, 32], strides = [1, 1]} : vector<8x128xf32> to vector<8x32xf32>
    %136 = vector.extract_strided_slice %132 {offsets = [0, 96], sizes = [8, 32], strides = [1, 1]} : vector<8x128xf32> to vector<8x32xf32>
    %137 = vector.extract_strided_slice %133 {offsets = [0, 64], sizes = [8, 32], strides = [1, 1]} : vector<8x128xf32> to vector<8x32xf32>
    %138 = arith.mulf %135, %68 : vector<8x32xf32>
    %139 = arith.mulf %134, %137 : vector<8x32xf32>
    %140 = arith.addf %138, %139 : vector<8x32xf32>
    %141 = math.tanh %140 : vector<8x32xf32>
    %142 = arith.mulf %136, %141 : vector<8x32xf32>
    %143 = arith.truncf %142 : vector<8x32xf32> to vector<8x32xbf16>
    %cst_38 = arith.constant dense<0.000000e+00> : vector<8x128xf32>
    %144 = tpu.matmul %143, %3, %cst_38 {dimension_numbers = #tpu.dot_dimension_numbers<[1], [0], [0], [1], [0, 0, 1, 1], [], []>} : vector<8x32xbf16>, vector<32x128xbf16>, vector<8x128xf32> -> vector<8x128xf32>
    %145 = arith.addf %144, %15 : vector<8x128xf32>
    %c1 = arith.constant 1 : index
    %c0_39 = arith.constant 0 : index
    %c0_40 = arith.constant 0 : index
    %146 = vector.load %arg1[%c1, %c0_39, %c0_40] : memref<8x8x128xf32, #tpu.memory_space<vmem>>, vector<1x8x128xf32>
    %147 = vector.shape_cast %146 : vector<1x8x128xf32> to vector<8x128xf32>
    %148 = arith.addf %145, %147 : vector<8x128xf32>
    %cst_41 = arith.constant dense<0xFF800000> : vector<8xf32>
    %149 = vector.multi_reduction <maximumf>, %148, %cst_41 [1] : vector<8x128xf32> to vector<8xf32>
    %150 = vector.shape_cast %149 : vector<8xf32> to vector<8x1xf32>
    %151 = vector.broadcast %150 : vector<8x1xf32> to vector<8x128xf32>
    %152 = arith.cmpf oge, %148, %151 : vector<8x128xf32>
    %c128_i32_42 = arith.constant 128 : i32
    %153 = vector.broadcast %c128_i32_42 : i32 to vector<8x128xi32>
    %154 = arith.select %152, %27, %153 : vector<8x128xi1>, vector<8x128xi32>
    %cst_43 = arith.constant dense<2147483647> : vector<8xi32>
    %155 = vector.multi_reduction <minsi>, %154, %cst_43 [1] : vector<8x128xi32> to vector<8xi32>
    %156 = vector.shape_cast %155 : vector<8xi32> to vector<8x1xi32>
    %c2_i32_44 = arith.constant 2 : i32
    %157 = vector.broadcast %c2_i32_44 : i32 to vector<8x1xi32>
    %158 = arith.cmpi eq, %156, %157 : vector<8x1xi32>
    %159 = arith.extui %158 : vector<8x1xi1> to vector<8x1xi32>
    %160 = arith.maxsi %88, %159 : vector<8x1xi32>
    %c0_i32_45 = arith.constant 0 : i32
    %161 = vector.broadcast %c0_i32_45 : i32 to vector<8x1xi32>
    %162 = arith.cmpi sgt, %160, %161 : vector<8x1xi32>
    %c0_i32_46 = arith.constant 0 : i32
    %163 = vector.broadcast %c0_i32_46 : i32 to vector<8x1xi32>
    %164 = arith.select %162, %163, %156 : vector<8x1xi1>, vector<8x1xi32>
    %c1_i32_47 = arith.constant 1 : i32
    %165 = vector.broadcast %c1_i32_47 : i32 to vector<8x1xi32>
    %166 = arith.subi %165, %160 : vector<8x1xi32>
    %167 = arith.addi %95, %166 : vector<8x1xi32>
    %c1_i32_48 = arith.constant 1 : i32
    %168 = vector.broadcast %c1_i32_48 : i32 to vector<8x8xi32>
    %169 = arith.cmpi eq, %28, %168 : vector<8x8xi32>
    %170 = vector.shape_cast %164 : vector<8x1xi32> to vector<8x1xi32>
    %171 = vector.broadcast %170 : vector<8x1xi32> to vector<8x8xi32>
    %172 = arith.select %169, %171, %100 : vector<8x8xi1>, vector<8x8xi32>
    %173 = vector.broadcast %164 : vector<8x1xi32> to vector<8x32xi32>
    %174 = arith.cmpi eq, %26, %173 : vector<8x32xi32>
    %175 = arith.extui %174 : vector<8x32xi1> to vector<8x32xi32>
    %176 = arith.sitofp %175 : vector<8x32xi32> to vector<8x32xf32>
    %177 = tpu.concatenate %176, %123 in 1 : vector<8x32xf32>, vector<8x32xf32> -> vector<8x64xf32>
    %178 = arith.truncf %177 : vector<8x64xf32> to vector<8x64xbf16>
    %cst_49 = arith.constant dense<0.000000e+00> : vector<8x128xf32>
    %179 = tpu.matmul %178, %1, %cst_49 {dimension_numbers = #tpu.dot_dimension_numbers<[1], [0], [0], [1], [0, 0, 1, 1], [], []>} : vector<8x64xbf16>, vector<64x128xbf16>, vector<8x128xf32> -> vector<8x128xf32>
    %180 = arith.addf %179, %9 : vector<8x128xf32>
    %181 = arith.negf %180 : vector<8x128xf32>
    %182 = math.exp %181 : vector<8x128xf32>
    %cst_50 = arith.constant 1.000000e+00 : f32
    %183 = vector.broadcast %cst_50 : f32 to vector<8x128xf32>
    %184 = arith.addf %183, %182 : vector<8x128xf32>
    %185 = arith.divf %183, %184 : vector<8x128xf32>
    %186 = math.tanh %180 : vector<8x128xf32>
    %187 = vector.extract_strided_slice %185 {offsets = [0, 0], sizes = [8, 32], strides = [1, 1]} : vector<8x128xf32> to vector<8x32xf32>
    %188 = vector.extract_strided_slice %185 {offsets = [0, 32], sizes = [8, 32], strides = [1, 1]} : vector<8x128xf32> to vector<8x32xf32>
    %189 = vector.extract_strided_slice %185 {offsets = [0, 96], sizes = [8, 32], strides = [1, 1]} : vector<8x128xf32> to vector<8x32xf32>
    %190 = vector.extract_strided_slice %186 {offsets = [0, 64], sizes = [8, 32], strides = [1, 1]} : vector<8x128xf32> to vector<8x32xf32>
    %191 = arith.mulf %188, %121 : vector<8x32xf32>
    %192 = arith.mulf %187, %190 : vector<8x32xf32>
    %193 = arith.addf %191, %192 : vector<8x32xf32>
    %194 = math.tanh %193 : vector<8x32xf32>
    %195 = arith.mulf %189, %194 : vector<8x32xf32>
    %196 = tpu.concatenate %195, %142 in 1 : vector<8x32xf32>, vector<8x32xf32> -> vector<8x64xf32>
    %197 = arith.truncf %196 : vector<8x64xf32> to vector<8x64xbf16>
    %cst_51 = arith.constant dense<0.000000e+00> : vector<8x128xf32>
    %198 = tpu.matmul %197, %2, %cst_51 {dimension_numbers = #tpu.dot_dimension_numbers<[1], [0], [0], [1], [0, 0, 1, 1], [], []>} : vector<8x64xbf16>, vector<64x128xbf16>, vector<8x128xf32> -> vector<8x128xf32>
    %199 = arith.addf %198, %12 : vector<8x128xf32>
    %200 = arith.negf %199 : vector<8x128xf32>
    %201 = math.exp %200 : vector<8x128xf32>
    %cst_52 = arith.constant 1.000000e+00 : f32
    %202 = vector.broadcast %cst_52 : f32 to vector<8x128xf32>
    %203 = arith.addf %202, %201 : vector<8x128xf32>
    %204 = arith.divf %202, %203 : vector<8x128xf32>
    %205 = math.tanh %199 : vector<8x128xf32>
    %206 = vector.extract_strided_slice %204 {offsets = [0, 0], sizes = [8, 32], strides = [1, 1]} : vector<8x128xf32> to vector<8x32xf32>
    %207 = vector.extract_strided_slice %204 {offsets = [0, 32], sizes = [8, 32], strides = [1, 1]} : vector<8x128xf32> to vector<8x32xf32>
    %208 = vector.extract_strided_slice %204 {offsets = [0, 96], sizes = [8, 32], strides = [1, 1]} : vector<8x128xf32> to vector<8x32xf32>
    %209 = vector.extract_strided_slice %205 {offsets = [0, 64], sizes = [8, 32], strides = [1, 1]} : vector<8x128xf32> to vector<8x32xf32>
    %210 = arith.mulf %207, %140 : vector<8x32xf32>
    %211 = arith.mulf %206, %209 : vector<8x32xf32>
    %212 = arith.addf %210, %211 : vector<8x32xf32>
    %213 = math.tanh %212 : vector<8x32xf32>
    %214 = arith.mulf %208, %213 : vector<8x32xf32>
    %215 = arith.truncf %214 : vector<8x32xf32> to vector<8x32xbf16>
    %cst_53 = arith.constant dense<0.000000e+00> : vector<8x128xf32>
    %216 = tpu.matmul %215, %3, %cst_53 {dimension_numbers = #tpu.dot_dimension_numbers<[1], [0], [0], [1], [0, 0, 1, 1], [], []>} : vector<8x32xbf16>, vector<32x128xbf16>, vector<8x128xf32> -> vector<8x128xf32>
    %217 = arith.addf %216, %15 : vector<8x128xf32>
    %c2 = arith.constant 2 : index
    %c0_54 = arith.constant 0 : index
    %c0_55 = arith.constant 0 : index
    %218 = vector.load %arg1[%c2, %c0_54, %c0_55] : memref<8x8x128xf32, #tpu.memory_space<vmem>>, vector<1x8x128xf32>
    %219 = vector.shape_cast %218 : vector<1x8x128xf32> to vector<8x128xf32>
    %220 = arith.addf %217, %219 : vector<8x128xf32>
    %cst_56 = arith.constant dense<0xFF800000> : vector<8xf32>
    %221 = vector.multi_reduction <maximumf>, %220, %cst_56 [1] : vector<8x128xf32> to vector<8xf32>
    %222 = vector.shape_cast %221 : vector<8xf32> to vector<8x1xf32>
    %223 = vector.broadcast %222 : vector<8x1xf32> to vector<8x128xf32>
    %224 = arith.cmpf oge, %220, %223 : vector<8x128xf32>
    %c128_i32_57 = arith.constant 128 : i32
    %225 = vector.broadcast %c128_i32_57 : i32 to vector<8x128xi32>
    %226 = arith.select %224, %27, %225 : vector<8x128xi1>, vector<8x128xi32>
    %cst_58 = arith.constant dense<2147483647> : vector<8xi32>
    %227 = vector.multi_reduction <minsi>, %226, %cst_58 [1] : vector<8x128xi32> to vector<8xi32>
    %228 = vector.shape_cast %227 : vector<8xi32> to vector<8x1xi32>
    %c2_i32_59 = arith.constant 2 : i32
    %229 = vector.broadcast %c2_i32_59 : i32 to vector<8x1xi32>
    %230 = arith.cmpi eq, %228, %229 : vector<8x1xi32>
    %231 = arith.extui %230 : vector<8x1xi1> to vector<8x1xi32>
    %232 = arith.maxsi %160, %231 : vector<8x1xi32>
    %c0_i32_60 = arith.constant 0 : i32
    %233 = vector.broadcast %c0_i32_60 : i32 to vector<8x1xi32>
    %234 = arith.cmpi sgt, %232, %233 : vector<8x1xi32>
    %c0_i32_61 = arith.constant 0 : i32
    %235 = vector.broadcast %c0_i32_61 : i32 to vector<8x1xi32>
    %236 = arith.select %234, %235, %228 : vector<8x1xi1>, vector<8x1xi32>
    %c1_i32_62 = arith.constant 1 : i32
    %237 = vector.broadcast %c1_i32_62 : i32 to vector<8x1xi32>
    %238 = arith.subi %237, %232 : vector<8x1xi32>
    %239 = arith.addi %167, %238 : vector<8x1xi32>
    %c2_i32_63 = arith.constant 2 : i32
    %240 = vector.broadcast %c2_i32_63 : i32 to vector<8x8xi32>
    %241 = arith.cmpi eq, %28, %240 : vector<8x8xi32>
    %242 = vector.shape_cast %236 : vector<8x1xi32> to vector<8x1xi32>
    %243 = vector.broadcast %242 : vector<8x1xi32> to vector<8x8xi32>
    %244 = arith.select %241, %243, %172 : vector<8x8xi1>, vector<8x8xi32>
    %245 = vector.broadcast %236 : vector<8x1xi32> to vector<8x32xi32>
    %246 = arith.cmpi eq, %26, %245 : vector<8x32xi32>
    %247 = arith.extui %246 : vector<8x32xi1> to vector<8x32xi32>
    %248 = arith.sitofp %247 : vector<8x32xi32> to vector<8x32xf32>
    %249 = tpu.concatenate %248, %195 in 1 : vector<8x32xf32>, vector<8x32xf32> -> vector<8x64xf32>
    %250 = arith.truncf %249 : vector<8x64xf32> to vector<8x64xbf16>
    %cst_64 = arith.constant dense<0.000000e+00> : vector<8x128xf32>
    %251 = tpu.matmul %250, %1, %cst_64 {dimension_numbers = #tpu.dot_dimension_numbers<[1], [0], [0], [1], [0, 0, 1, 1], [], []>} : vector<8x64xbf16>, vector<64x128xbf16>, vector<8x128xf32> -> vector<8x128xf32>
    %252 = arith.addf %251, %9 : vector<8x128xf32>
    %253 = arith.negf %252 : vector<8x128xf32>
    %254 = math.exp %253 : vector<8x128xf32>
    %cst_65 = arith.constant 1.000000e+00 : f32
    %255 = vector.broadcast %cst_65 : f32 to vector<8x128xf32>
    %256 = arith.addf %255, %254 : vector<8x128xf32>
    %257 = arith.divf %255, %256 : vector<8x128xf32>
    %258 = math.tanh %252 : vector<8x128xf32>
    %259 = vector.extract_strided_slice %257 {offsets = [0, 0], sizes = [8, 32], strides = [1, 1]} : vector<8x128xf32> to vector<8x32xf32>
    %260 = vector.extract_strided_slice %257 {offsets = [0, 32], sizes = [8, 32], strides = [1, 1]} : vector<8x128xf32> to vector<8x32xf32>
    %261 = vector.extract_strided_slice %257 {offsets = [0, 96], sizes = [8, 32], strides = [1, 1]} : vector<8x128xf32> to vector<8x32xf32>
    %262 = vector.extract_strided_slice %258 {offsets = [0, 64], sizes = [8, 32], strides = [1, 1]} : vector<8x128xf32> to vector<8x32xf32>
    %263 = arith.mulf %260, %193 : vector<8x32xf32>
    %264 = arith.mulf %259, %262 : vector<8x32xf32>
    %265 = arith.addf %263, %264 : vector<8x32xf32>
    %266 = math.tanh %265 : vector<8x32xf32>
    %267 = arith.mulf %261, %266 : vector<8x32xf32>
    %268 = tpu.concatenate %267, %214 in 1 : vector<8x32xf32>, vector<8x32xf32> -> vector<8x64xf32>
    %269 = arith.truncf %268 : vector<8x64xf32> to vector<8x64xbf16>
    %cst_66 = arith.constant dense<0.000000e+00> : vector<8x128xf32>
    %270 = tpu.matmul %269, %2, %cst_66 {dimension_numbers = #tpu.dot_dimension_numbers<[1], [0], [0], [1], [0, 0, 1, 1], [], []>} : vector<8x64xbf16>, vector<64x128xbf16>, vector<8x128xf32> -> vector<8x128xf32>
    %271 = arith.addf %270, %12 : vector<8x128xf32>
    %272 = arith.negf %271 : vector<8x128xf32>
    %273 = math.exp %272 : vector<8x128xf32>
    %cst_67 = arith.constant 1.000000e+00 : f32
    %274 = vector.broadcast %cst_67 : f32 to vector<8x128xf32>
    %275 = arith.addf %274, %273 : vector<8x128xf32>
    %276 = arith.divf %274, %275 : vector<8x128xf32>
    %277 = math.tanh %271 : vector<8x128xf32>
    %278 = vector.extract_strided_slice %276 {offsets = [0, 0], sizes = [8, 32], strides = [1, 1]} : vector<8x128xf32> to vector<8x32xf32>
    %279 = vector.extract_strided_slice %276 {offsets = [0, 32], sizes = [8, 32], strides = [1, 1]} : vector<8x128xf32> to vector<8x32xf32>
    %280 = vector.extract_strided_slice %276 {offsets = [0, 96], sizes = [8, 32], strides = [1, 1]} : vector<8x128xf32> to vector<8x32xf32>
    %281 = vector.extract_strided_slice %277 {offsets = [0, 64], sizes = [8, 32], strides = [1, 1]} : vector<8x128xf32> to vector<8x32xf32>
    %282 = arith.mulf %279, %212 : vector<8x32xf32>
    %283 = arith.mulf %278, %281 : vector<8x32xf32>
    %284 = arith.addf %282, %283 : vector<8x32xf32>
    %285 = math.tanh %284 : vector<8x32xf32>
    %286 = arith.mulf %280, %285 : vector<8x32xf32>
    %287 = arith.truncf %286 : vector<8x32xf32> to vector<8x32xbf16>
    %cst_68 = arith.constant dense<0.000000e+00> : vector<8x128xf32>
    %288 = tpu.matmul %287, %3, %cst_68 {dimension_numbers = #tpu.dot_dimension_numbers<[1], [0], [0], [1], [0, 0, 1, 1], [], []>} : vector<8x32xbf16>, vector<32x128xbf16>, vector<8x128xf32> -> vector<8x128xf32>
    %289 = arith.addf %288, %15 : vector<8x128xf32>
    %c3 = arith.constant 3 : index
    %c0_69 = arith.constant 0 : index
    %c0_70 = arith.constant 0 : index
    %290 = vector.load %arg1[%c3, %c0_69, %c0_70] : memref<8x8x128xf32, #tpu.memory_space<vmem>>, vector<1x8x128xf32>
    %291 = vector.shape_cast %290 : vector<1x8x128xf32> to vector<8x128xf32>
    %292 = arith.addf %289, %291 : vector<8x128xf32>
    %cst_71 = arith.constant dense<0xFF800000> : vector<8xf32>
    %293 = vector.multi_reduction <maximumf>, %292, %cst_71 [1] : vector<8x128xf32> to vector<8xf32>
    %294 = vector.shape_cast %293 : vector<8xf32> to vector<8x1xf32>
    %295 = vector.broadcast %294 : vector<8x1xf32> to vector<8x128xf32>
    %296 = arith.cmpf oge, %292, %295 : vector<8x128xf32>
    %c128_i32_72 = arith.constant 128 : i32
    %297 = vector.broadcast %c128_i32_72 : i32 to vector<8x128xi32>
    %298 = arith.select %296, %27, %297 : vector<8x128xi1>, vector<8x128xi32>
    %cst_73 = arith.constant dense<2147483647> : vector<8xi32>
    %299 = vector.multi_reduction <minsi>, %298, %cst_73 [1] : vector<8x128xi32> to vector<8xi32>
    %300 = vector.shape_cast %299 : vector<8xi32> to vector<8x1xi32>
    %c2_i32_74 = arith.constant 2 : i32
    %301 = vector.broadcast %c2_i32_74 : i32 to vector<8x1xi32>
    %302 = arith.cmpi eq, %300, %301 : vector<8x1xi32>
    %303 = arith.extui %302 : vector<8x1xi1> to vector<8x1xi32>
    %304 = arith.maxsi %232, %303 : vector<8x1xi32>
    %c0_i32_75 = arith.constant 0 : i32
    %305 = vector.broadcast %c0_i32_75 : i32 to vector<8x1xi32>
    %306 = arith.cmpi sgt, %304, %305 : vector<8x1xi32>
    %c0_i32_76 = arith.constant 0 : i32
    %307 = vector.broadcast %c0_i32_76 : i32 to vector<8x1xi32>
    %308 = arith.select %306, %307, %300 : vector<8x1xi1>, vector<8x1xi32>
    %c1_i32_77 = arith.constant 1 : i32
    %309 = vector.broadcast %c1_i32_77 : i32 to vector<8x1xi32>
    %310 = arith.subi %309, %304 : vector<8x1xi32>
    %311 = arith.addi %239, %310 : vector<8x1xi32>
    %c3_i32 = arith.constant 3 : i32
    %312 = vector.broadcast %c3_i32 : i32 to vector<8x8xi32>
    %313 = arith.cmpi eq, %28, %312 : vector<8x8xi32>
    %314 = vector.shape_cast %308 : vector<8x1xi32> to vector<8x1xi32>
    %315 = vector.broadcast %314 : vector<8x1xi32> to vector<8x8xi32>
    %316 = arith.select %313, %315, %244 : vector<8x8xi1>, vector<8x8xi32>
    %317 = vector.broadcast %308 : vector<8x1xi32> to vector<8x32xi32>
    %318 = arith.cmpi eq, %26, %317 : vector<8x32xi32>
    %319 = arith.extui %318 : vector<8x32xi1> to vector<8x32xi32>
    %320 = arith.sitofp %319 : vector<8x32xi32> to vector<8x32xf32>
    %321 = tpu.concatenate %320, %267 in 1 : vector<8x32xf32>, vector<8x32xf32> -> vector<8x64xf32>
    %322 = arith.truncf %321 : vector<8x64xf32> to vector<8x64xbf16>
    %cst_78 = arith.constant dense<0.000000e+00> : vector<8x128xf32>
    %323 = tpu.matmul %322, %1, %cst_78 {dimension_numbers = #tpu.dot_dimension_numbers<[1], [0], [0], [1], [0, 0, 1, 1], [], []>} : vector<8x64xbf16>, vector<64x128xbf16>, vector<8x128xf32> -> vector<8x128xf32>
    %324 = arith.addf %323, %9 : vector<8x128xf32>
    %325 = arith.negf %324 : vector<8x128xf32>
    %326 = math.exp %325 : vector<8x128xf32>
    %cst_79 = arith.constant 1.000000e+00 : f32
    %327 = vector.broadcast %cst_79 : f32 to vector<8x128xf32>
    %328 = arith.addf %327, %326 : vector<8x128xf32>
    %329 = arith.divf %327, %328 : vector<8x128xf32>
    %330 = math.tanh %324 : vector<8x128xf32>
    %331 = vector.extract_strided_slice %329 {offsets = [0, 0], sizes = [8, 32], strides = [1, 1]} : vector<8x128xf32> to vector<8x32xf32>
    %332 = vector.extract_strided_slice %329 {offsets = [0, 32], sizes = [8, 32], strides = [1, 1]} : vector<8x128xf32> to vector<8x32xf32>
    %333 = vector.extract_strided_slice %329 {offsets = [0, 96], sizes = [8, 32], strides = [1, 1]} : vector<8x128xf32> to vector<8x32xf32>
    %334 = vector.extract_strided_slice %330 {offsets = [0, 64], sizes = [8, 32], strides = [1, 1]} : vector<8x128xf32> to vector<8x32xf32>
    %335 = arith.mulf %332, %265 : vector<8x32xf32>
    %336 = arith.mulf %331, %334 : vector<8x32xf32>
    %337 = arith.addf %335, %336 : vector<8x32xf32>
    %338 = math.tanh %337 : vector<8x32xf32>
    %339 = arith.mulf %333, %338 : vector<8x32xf32>
    %340 = tpu.concatenate %339, %286 in 1 : vector<8x32xf32>, vector<8x32xf32> -> vector<8x64xf32>
    %341 = arith.truncf %340 : vector<8x64xf32> to vector<8x64xbf16>
    %cst_80 = arith.constant dense<0.000000e+00> : vector<8x128xf32>
    %342 = tpu.matmul %341, %2, %cst_80 {dimension_numbers = #tpu.dot_dimension_numbers<[1], [0], [0], [1], [0, 0, 1, 1], [], []>} : vector<8x64xbf16>, vector<64x128xbf16>, vector<8x128xf32> -> vector<8x128xf32>
    %343 = arith.addf %342, %12 : vector<8x128xf32>
    %344 = arith.negf %343 : vector<8x128xf32>
    %345 = math.exp %344 : vector<8x128xf32>
    %cst_81 = arith.constant 1.000000e+00 : f32
    %346 = vector.broadcast %cst_81 : f32 to vector<8x128xf32>
    %347 = arith.addf %346, %345 : vector<8x128xf32>
    %348 = arith.divf %346, %347 : vector<8x128xf32>
    %349 = math.tanh %343 : vector<8x128xf32>
    %350 = vector.extract_strided_slice %348 {offsets = [0, 0], sizes = [8, 32], strides = [1, 1]} : vector<8x128xf32> to vector<8x32xf32>
    %351 = vector.extract_strided_slice %348 {offsets = [0, 32], sizes = [8, 32], strides = [1, 1]} : vector<8x128xf32> to vector<8x32xf32>
    %352 = vector.extract_strided_slice %348 {offsets = [0, 96], sizes = [8, 32], strides = [1, 1]} : vector<8x128xf32> to vector<8x32xf32>
    %353 = vector.extract_strided_slice %349 {offsets = [0, 64], sizes = [8, 32], strides = [1, 1]} : vector<8x128xf32> to vector<8x32xf32>
    %354 = arith.mulf %351, %284 : vector<8x32xf32>
    %355 = arith.mulf %350, %353 : vector<8x32xf32>
    %356 = arith.addf %354, %355 : vector<8x32xf32>
    %357 = math.tanh %356 : vector<8x32xf32>
    %358 = arith.mulf %352, %357 : vector<8x32xf32>
    %359 = arith.truncf %358 : vector<8x32xf32> to vector<8x32xbf16>
    %cst_82 = arith.constant dense<0.000000e+00> : vector<8x128xf32>
    %360 = tpu.matmul %359, %3, %cst_82 {dimension_numbers = #tpu.dot_dimension_numbers<[1], [0], [0], [1], [0, 0, 1, 1], [], []>} : vector<8x32xbf16>, vector<32x128xbf16>, vector<8x128xf32> -> vector<8x128xf32>
    %361 = arith.addf %360, %15 : vector<8x128xf32>
    %c4 = arith.constant 4 : index
    %c0_83 = arith.constant 0 : index
    %c0_84 = arith.constant 0 : index
    %362 = vector.load %arg1[%c4, %c0_83, %c0_84] : memref<8x8x128xf32, #tpu.memory_space<vmem>>, vector<1x8x128xf32>
    %363 = vector.shape_cast %362 : vector<1x8x128xf32> to vector<8x128xf32>
    %364 = arith.addf %361, %363 : vector<8x128xf32>
    %cst_85 = arith.constant dense<0xFF800000> : vector<8xf32>
    %365 = vector.multi_reduction <maximumf>, %364, %cst_85 [1] : vector<8x128xf32> to vector<8xf32>
    %366 = vector.shape_cast %365 : vector<8xf32> to vector<8x1xf32>
    %367 = vector.broadcast %366 : vector<8x1xf32> to vector<8x128xf32>
    %368 = arith.cmpf oge, %364, %367 : vector<8x128xf32>
    %c128_i32_86 = arith.constant 128 : i32
    %369 = vector.broadcast %c128_i32_86 : i32 to vector<8x128xi32>
    %370 = arith.select %368, %27, %369 : vector<8x128xi1>, vector<8x128xi32>
    %cst_87 = arith.constant dense<2147483647> : vector<8xi32>
    %371 = vector.multi_reduction <minsi>, %370, %cst_87 [1] : vector<8x128xi32> to vector<8xi32>
    %372 = vector.shape_cast %371 : vector<8xi32> to vector<8x1xi32>
    %c2_i32_88 = arith.constant 2 : i32
    %373 = vector.broadcast %c2_i32_88 : i32 to vector<8x1xi32>
    %374 = arith.cmpi eq, %372, %373 : vector<8x1xi32>
    %375 = arith.extui %374 : vector<8x1xi1> to vector<8x1xi32>
    %376 = arith.maxsi %304, %375 : vector<8x1xi32>
    %c0_i32_89 = arith.constant 0 : i32
    %377 = vector.broadcast %c0_i32_89 : i32 to vector<8x1xi32>
    %378 = arith.cmpi sgt, %376, %377 : vector<8x1xi32>
    %c0_i32_90 = arith.constant 0 : i32
    %379 = vector.broadcast %c0_i32_90 : i32 to vector<8x1xi32>
    %380 = arith.select %378, %379, %372 : vector<8x1xi1>, vector<8x1xi32>
    %c1_i32_91 = arith.constant 1 : i32
    %381 = vector.broadcast %c1_i32_91 : i32 to vector<8x1xi32>
    %382 = arith.subi %381, %376 : vector<8x1xi32>
    %383 = arith.addi %311, %382 : vector<8x1xi32>
    %c4_i32 = arith.constant 4 : i32
    %384 = vector.broadcast %c4_i32 : i32 to vector<8x8xi32>
    %385 = arith.cmpi eq, %28, %384 : vector<8x8xi32>
    %386 = vector.shape_cast %380 : vector<8x1xi32> to vector<8x1xi32>
    %387 = vector.broadcast %386 : vector<8x1xi32> to vector<8x8xi32>
    %388 = arith.select %385, %387, %316 : vector<8x8xi1>, vector<8x8xi32>
    %389 = vector.broadcast %380 : vector<8x1xi32> to vector<8x32xi32>
    %390 = arith.cmpi eq, %26, %389 : vector<8x32xi32>
    %391 = arith.extui %390 : vector<8x32xi1> to vector<8x32xi32>
    %392 = arith.sitofp %391 : vector<8x32xi32> to vector<8x32xf32>
    %393 = tpu.concatenate %392, %339 in 1 : vector<8x32xf32>, vector<8x32xf32> -> vector<8x64xf32>
    %394 = arith.truncf %393 : vector<8x64xf32> to vector<8x64xbf16>
    %cst_92 = arith.constant dense<0.000000e+00> : vector<8x128xf32>
    %395 = tpu.matmul %394, %1, %cst_92 {dimension_numbers = #tpu.dot_dimension_numbers<[1], [0], [0], [1], [0, 0, 1, 1], [], []>} : vector<8x64xbf16>, vector<64x128xbf16>, vector<8x128xf32> -> vector<8x128xf32>
    %396 = arith.addf %395, %9 : vector<8x128xf32>
    %397 = arith.negf %396 : vector<8x128xf32>
    %398 = math.exp %397 : vector<8x128xf32>
    %cst_93 = arith.constant 1.000000e+00 : f32
    %399 = vector.broadcast %cst_93 : f32 to vector<8x128xf32>
    %400 = arith.addf %399, %398 : vector<8x128xf32>
    %401 = arith.divf %399, %400 : vector<8x128xf32>
    %402 = math.tanh %396 : vector<8x128xf32>
    %403 = vector.extract_strided_slice %401 {offsets = [0, 0], sizes = [8, 32], strides = [1, 1]} : vector<8x128xf32> to vector<8x32xf32>
    %404 = vector.extract_strided_slice %401 {offsets = [0, 32], sizes = [8, 32], strides = [1, 1]} : vector<8x128xf32> to vector<8x32xf32>
    %405 = vector.extract_strided_slice %401 {offsets = [0, 96], sizes = [8, 32], strides = [1, 1]} : vector<8x128xf32> to vector<8x32xf32>
    %406 = vector.extract_strided_slice %402 {offsets = [0, 64], sizes = [8, 32], strides = [1, 1]} : vector<8x128xf32> to vector<8x32xf32>
    %407 = arith.mulf %404, %337 : vector<8x32xf32>
    %408 = arith.mulf %403, %406 : vector<8x32xf32>
    %409 = arith.addf %407, %408 : vector<8x32xf32>
    %410 = math.tanh %409 : vector<8x32xf32>
    %411 = arith.mulf %405, %410 : vector<8x32xf32>
    %412 = tpu.concatenate %411, %358 in 1 : vector<8x32xf32>, vector<8x32xf32> -> vector<8x64xf32>
    %413 = arith.truncf %412 : vector<8x64xf32> to vector<8x64xbf16>
    %cst_94 = arith.constant dense<0.000000e+00> : vector<8x128xf32>
    %414 = tpu.matmul %413, %2, %cst_94 {dimension_numbers = #tpu.dot_dimension_numbers<[1], [0], [0], [1], [0, 0, 1, 1], [], []>} : vector<8x64xbf16>, vector<64x128xbf16>, vector<8x128xf32> -> vector<8x128xf32>
    %415 = arith.addf %414, %12 : vector<8x128xf32>
    %416 = arith.negf %415 : vector<8x128xf32>
    %417 = math.exp %416 : vector<8x128xf32>
    %cst_95 = arith.constant 1.000000e+00 : f32
    %418 = vector.broadcast %cst_95 : f32 to vector<8x128xf32>
    %419 = arith.addf %418, %417 : vector<8x128xf32>
    %420 = arith.divf %418, %419 : vector<8x128xf32>
    %421 = math.tanh %415 : vector<8x128xf32>
    %422 = vector.extract_strided_slice %420 {offsets = [0, 0], sizes = [8, 32], strides = [1, 1]} : vector<8x128xf32> to vector<8x32xf32>
    %423 = vector.extract_strided_slice %420 {offsets = [0, 32], sizes = [8, 32], strides = [1, 1]} : vector<8x128xf32> to vector<8x32xf32>
    %424 = vector.extract_strided_slice %420 {offsets = [0, 96], sizes = [8, 32], strides = [1, 1]} : vector<8x128xf32> to vector<8x32xf32>
    %425 = vector.extract_strided_slice %421 {offsets = [0, 64], sizes = [8, 32], strides = [1, 1]} : vector<8x128xf32> to vector<8x32xf32>
    %426 = arith.mulf %423, %356 : vector<8x32xf32>
    %427 = arith.mulf %422, %425 : vector<8x32xf32>
    %428 = arith.addf %426, %427 : vector<8x32xf32>
    %429 = math.tanh %428 : vector<8x32xf32>
    %430 = arith.mulf %424, %429 : vector<8x32xf32>
    %431 = arith.truncf %430 : vector<8x32xf32> to vector<8x32xbf16>
    %cst_96 = arith.constant dense<0.000000e+00> : vector<8x128xf32>
    %432 = tpu.matmul %431, %3, %cst_96 {dimension_numbers = #tpu.dot_dimension_numbers<[1], [0], [0], [1], [0, 0, 1, 1], [], []>} : vector<8x32xbf16>, vector<32x128xbf16>, vector<8x128xf32> -> vector<8x128xf32>
    %433 = arith.addf %432, %15 : vector<8x128xf32>
    %c5 = arith.constant 5 : index
    %c0_97 = arith.constant 0 : index
    %c0_98 = arith.constant 0 : index
    %434 = vector.load %arg1[%c5, %c0_97, %c0_98] : memref<8x8x128xf32, #tpu.memory_space<vmem>>, vector<1x8x128xf32>
    %435 = vector.shape_cast %434 : vector<1x8x128xf32> to vector<8x128xf32>
    %436 = arith.addf %433, %435 : vector<8x128xf32>
    %cst_99 = arith.constant dense<0xFF800000> : vector<8xf32>
    %437 = vector.multi_reduction <maximumf>, %436, %cst_99 [1] : vector<8x128xf32> to vector<8xf32>
    %438 = vector.shape_cast %437 : vector<8xf32> to vector<8x1xf32>
    %439 = vector.broadcast %438 : vector<8x1xf32> to vector<8x128xf32>
    %440 = arith.cmpf oge, %436, %439 : vector<8x128xf32>
    %c128_i32_100 = arith.constant 128 : i32
    %441 = vector.broadcast %c128_i32_100 : i32 to vector<8x128xi32>
    %442 = arith.select %440, %27, %441 : vector<8x128xi1>, vector<8x128xi32>
    %cst_101 = arith.constant dense<2147483647> : vector<8xi32>
    %443 = vector.multi_reduction <minsi>, %442, %cst_101 [1] : vector<8x128xi32> to vector<8xi32>
    %444 = vector.shape_cast %443 : vector<8xi32> to vector<8x1xi32>
    %c2_i32_102 = arith.constant 2 : i32
    %445 = vector.broadcast %c2_i32_102 : i32 to vector<8x1xi32>
    %446 = arith.cmpi eq, %444, %445 : vector<8x1xi32>
    %447 = arith.extui %446 : vector<8x1xi1> to vector<8x1xi32>
    %448 = arith.maxsi %376, %447 : vector<8x1xi32>
    %c0_i32_103 = arith.constant 0 : i32
    %449 = vector.broadcast %c0_i32_103 : i32 to vector<8x1xi32>
    %450 = arith.cmpi sgt, %448, %449 : vector<8x1xi32>
    %c0_i32_104 = arith.constant 0 : i32
    %451 = vector.broadcast %c0_i32_104 : i32 to vector<8x1xi32>
    %452 = arith.select %450, %451, %444 : vector<8x1xi1>, vector<8x1xi32>
    %c1_i32_105 = arith.constant 1 : i32
    %453 = vector.broadcast %c1_i32_105 : i32 to vector<8x1xi32>
    %454 = arith.subi %453, %448 : vector<8x1xi32>
    %455 = arith.addi %383, %454 : vector<8x1xi32>
    %c5_i32 = arith.constant 5 : i32
    %456 = vector.broadcast %c5_i32 : i32 to vector<8x8xi32>
    %457 = arith.cmpi eq, %28, %456 : vector<8x8xi32>
    %458 = vector.shape_cast %452 : vector<8x1xi32> to vector<8x1xi32>
    %459 = vector.broadcast %458 : vector<8x1xi32> to vector<8x8xi32>
    %460 = arith.select %457, %459, %388 : vector<8x8xi1>, vector<8x8xi32>
    %461 = vector.broadcast %452 : vector<8x1xi32> to vector<8x32xi32>
    %462 = arith.cmpi eq, %26, %461 : vector<8x32xi32>
    %463 = arith.extui %462 : vector<8x32xi1> to vector<8x32xi32>
    %464 = arith.sitofp %463 : vector<8x32xi32> to vector<8x32xf32>
    %465 = tpu.concatenate %464, %411 in 1 : vector<8x32xf32>, vector<8x32xf32> -> vector<8x64xf32>
    %466 = arith.truncf %465 : vector<8x64xf32> to vector<8x64xbf16>
    %cst_106 = arith.constant dense<0.000000e+00> : vector<8x128xf32>
    %467 = tpu.matmul %466, %1, %cst_106 {dimension_numbers = #tpu.dot_dimension_numbers<[1], [0], [0], [1], [0, 0, 1, 1], [], []>} : vector<8x64xbf16>, vector<64x128xbf16>, vector<8x128xf32> -> vector<8x128xf32>
    %468 = arith.addf %467, %9 : vector<8x128xf32>
    %469 = arith.negf %468 : vector<8x128xf32>
    %470 = math.exp %469 : vector<8x128xf32>
    %cst_107 = arith.constant 1.000000e+00 : f32
    %471 = vector.broadcast %cst_107 : f32 to vector<8x128xf32>
    %472 = arith.addf %471, %470 : vector<8x128xf32>
    %473 = arith.divf %471, %472 : vector<8x128xf32>
    %474 = math.tanh %468 : vector<8x128xf32>
    %475 = vector.extract_strided_slice %473 {offsets = [0, 0], sizes = [8, 32], strides = [1, 1]} : vector<8x128xf32> to vector<8x32xf32>
    %476 = vector.extract_strided_slice %473 {offsets = [0, 32], sizes = [8, 32], strides = [1, 1]} : vector<8x128xf32> to vector<8x32xf32>
    %477 = vector.extract_strided_slice %473 {offsets = [0, 96], sizes = [8, 32], strides = [1, 1]} : vector<8x128xf32> to vector<8x32xf32>
    %478 = vector.extract_strided_slice %474 {offsets = [0, 64], sizes = [8, 32], strides = [1, 1]} : vector<8x128xf32> to vector<8x32xf32>
    %479 = arith.mulf %476, %409 : vector<8x32xf32>
    %480 = arith.mulf %475, %478 : vector<8x32xf32>
    %481 = arith.addf %479, %480 : vector<8x32xf32>
    %482 = math.tanh %481 : vector<8x32xf32>
    %483 = arith.mulf %477, %482 : vector<8x32xf32>
    %484 = tpu.concatenate %483, %430 in 1 : vector<8x32xf32>, vector<8x32xf32> -> vector<8x64xf32>
    %485 = arith.truncf %484 : vector<8x64xf32> to vector<8x64xbf16>
    %cst_108 = arith.constant dense<0.000000e+00> : vector<8x128xf32>
    %486 = tpu.matmul %485, %2, %cst_108 {dimension_numbers = #tpu.dot_dimension_numbers<[1], [0], [0], [1], [0, 0, 1, 1], [], []>} : vector<8x64xbf16>, vector<64x128xbf16>, vector<8x128xf32> -> vector<8x128xf32>
    %487 = arith.addf %486, %12 : vector<8x128xf32>
    %488 = arith.negf %487 : vector<8x128xf32>
    %489 = math.exp %488 : vector<8x128xf32>
    %cst_109 = arith.constant 1.000000e+00 : f32
    %490 = vector.broadcast %cst_109 : f32 to vector<8x128xf32>
    %491 = arith.addf %490, %489 : vector<8x128xf32>
    %492 = arith.divf %490, %491 : vector<8x128xf32>
    %493 = math.tanh %487 : vector<8x128xf32>
    %494 = vector.extract_strided_slice %492 {offsets = [0, 0], sizes = [8, 32], strides = [1, 1]} : vector<8x128xf32> to vector<8x32xf32>
    %495 = vector.extract_strided_slice %492 {offsets = [0, 32], sizes = [8, 32], strides = [1, 1]} : vector<8x128xf32> to vector<8x32xf32>
    %496 = vector.extract_strided_slice %492 {offsets = [0, 96], sizes = [8, 32], strides = [1, 1]} : vector<8x128xf32> to vector<8x32xf32>
    %497 = vector.extract_strided_slice %493 {offsets = [0, 64], sizes = [8, 32], strides = [1, 1]} : vector<8x128xf32> to vector<8x32xf32>
    %498 = arith.mulf %495, %428 : vector<8x32xf32>
    %499 = arith.mulf %494, %497 : vector<8x32xf32>
    %500 = arith.addf %498, %499 : vector<8x32xf32>
    %501 = math.tanh %500 : vector<8x32xf32>
    %502 = arith.mulf %496, %501 : vector<8x32xf32>
    %503 = arith.truncf %502 : vector<8x32xf32> to vector<8x32xbf16>
    %cst_110 = arith.constant dense<0.000000e+00> : vector<8x128xf32>
    %504 = tpu.matmul %503, %3, %cst_110 {dimension_numbers = #tpu.dot_dimension_numbers<[1], [0], [0], [1], [0, 0, 1, 1], [], []>} : vector<8x32xbf16>, vector<32x128xbf16>, vector<8x128xf32> -> vector<8x128xf32>
    %505 = arith.addf %504, %15 : vector<8x128xf32>
    %c6 = arith.constant 6 : index
    %c0_111 = arith.constant 0 : index
    %c0_112 = arith.constant 0 : index
    %506 = vector.load %arg1[%c6, %c0_111, %c0_112] : memref<8x8x128xf32, #tpu.memory_space<vmem>>, vector<1x8x128xf32>
    %507 = vector.shape_cast %506 : vector<1x8x128xf32> to vector<8x128xf32>
    %508 = arith.addf %505, %507 : vector<8x128xf32>
    %cst_113 = arith.constant dense<0xFF800000> : vector<8xf32>
    %509 = vector.multi_reduction <maximumf>, %508, %cst_113 [1] : vector<8x128xf32> to vector<8xf32>
    %510 = vector.shape_cast %509 : vector<8xf32> to vector<8x1xf32>
    %511 = vector.broadcast %510 : vector<8x1xf32> to vector<8x128xf32>
    %512 = arith.cmpf oge, %508, %511 : vector<8x128xf32>
    %c128_i32_114 = arith.constant 128 : i32
    %513 = vector.broadcast %c128_i32_114 : i32 to vector<8x128xi32>
    %514 = arith.select %512, %27, %513 : vector<8x128xi1>, vector<8x128xi32>
    %cst_115 = arith.constant dense<2147483647> : vector<8xi32>
    %515 = vector.multi_reduction <minsi>, %514, %cst_115 [1] : vector<8x128xi32> to vector<8xi32>
    %516 = vector.shape_cast %515 : vector<8xi32> to vector<8x1xi32>
    %c2_i32_116 = arith.constant 2 : i32
    %517 = vector.broadcast %c2_i32_116 : i32 to vector<8x1xi32>
    %518 = arith.cmpi eq, %516, %517 : vector<8x1xi32>
    %519 = arith.extui %518 : vector<8x1xi1> to vector<8x1xi32>
    %520 = arith.maxsi %448, %519 : vector<8x1xi32>
    %c0_i32_117 = arith.constant 0 : i32
    %521 = vector.broadcast %c0_i32_117 : i32 to vector<8x1xi32>
    %522 = arith.cmpi sgt, %520, %521 : vector<8x1xi32>
    %c0_i32_118 = arith.constant 0 : i32
    %523 = vector.broadcast %c0_i32_118 : i32 to vector<8x1xi32>
    %524 = arith.select %522, %523, %516 : vector<8x1xi1>, vector<8x1xi32>
    %c1_i32_119 = arith.constant 1 : i32
    %525 = vector.broadcast %c1_i32_119 : i32 to vector<8x1xi32>
    %526 = arith.subi %525, %520 : vector<8x1xi32>
    %527 = arith.addi %455, %526 : vector<8x1xi32>
    %c6_i32 = arith.constant 6 : i32
    %528 = vector.broadcast %c6_i32 : i32 to vector<8x8xi32>
    %529 = arith.cmpi eq, %28, %528 : vector<8x8xi32>
    %530 = vector.shape_cast %524 : vector<8x1xi32> to vector<8x1xi32>
    %531 = vector.broadcast %530 : vector<8x1xi32> to vector<8x8xi32>
    %532 = arith.select %529, %531, %460 : vector<8x8xi1>, vector<8x8xi32>
    %533 = vector.broadcast %524 : vector<8x1xi32> to vector<8x32xi32>
    %534 = arith.cmpi eq, %26, %533 : vector<8x32xi32>
    %535 = arith.extui %534 : vector<8x32xi1> to vector<8x32xi32>
    %536 = arith.sitofp %535 : vector<8x32xi32> to vector<8x32xf32>
    %537 = tpu.concatenate %536, %483 in 1 : vector<8x32xf32>, vector<8x32xf32> -> vector<8x64xf32>
    %538 = arith.truncf %537 : vector<8x64xf32> to vector<8x64xbf16>
    %cst_120 = arith.constant dense<0.000000e+00> : vector<8x128xf32>
    %539 = tpu.matmul %538, %1, %cst_120 {dimension_numbers = #tpu.dot_dimension_numbers<[1], [0], [0], [1], [0, 0, 1, 1], [], []>} : vector<8x64xbf16>, vector<64x128xbf16>, vector<8x128xf32> -> vector<8x128xf32>
    %540 = arith.addf %539, %9 : vector<8x128xf32>
    %541 = arith.negf %540 : vector<8x128xf32>
    %542 = math.exp %541 : vector<8x128xf32>
    %cst_121 = arith.constant 1.000000e+00 : f32
    %543 = vector.broadcast %cst_121 : f32 to vector<8x128xf32>
    %544 = arith.addf %543, %542 : vector<8x128xf32>
    %545 = arith.divf %543, %544 : vector<8x128xf32>
    %546 = math.tanh %540 : vector<8x128xf32>
    %547 = vector.extract_strided_slice %545 {offsets = [0, 0], sizes = [8, 32], strides = [1, 1]} : vector<8x128xf32> to vector<8x32xf32>
    %548 = vector.extract_strided_slice %545 {offsets = [0, 32], sizes = [8, 32], strides = [1, 1]} : vector<8x128xf32> to vector<8x32xf32>
    %549 = vector.extract_strided_slice %545 {offsets = [0, 96], sizes = [8, 32], strides = [1, 1]} : vector<8x128xf32> to vector<8x32xf32>
    %550 = vector.extract_strided_slice %546 {offsets = [0, 64], sizes = [8, 32], strides = [1, 1]} : vector<8x128xf32> to vector<8x32xf32>
    %551 = arith.mulf %548, %481 : vector<8x32xf32>
    %552 = arith.mulf %547, %550 : vector<8x32xf32>
    %553 = arith.addf %551, %552 : vector<8x32xf32>
    %554 = math.tanh %553 : vector<8x32xf32>
    %555 = arith.mulf %549, %554 : vector<8x32xf32>
    %556 = tpu.concatenate %555, %502 in 1 : vector<8x32xf32>, vector<8x32xf32> -> vector<8x64xf32>
    %557 = arith.truncf %556 : vector<8x64xf32> to vector<8x64xbf16>
    %cst_122 = arith.constant dense<0.000000e+00> : vector<8x128xf32>
    %558 = tpu.matmul %557, %2, %cst_122 {dimension_numbers = #tpu.dot_dimension_numbers<[1], [0], [0], [1], [0, 0, 1, 1], [], []>} : vector<8x64xbf16>, vector<64x128xbf16>, vector<8x128xf32> -> vector<8x128xf32>
    %559 = arith.addf %558, %12 : vector<8x128xf32>
    %560 = arith.negf %559 : vector<8x128xf32>
    %561 = math.exp %560 : vector<8x128xf32>
    %cst_123 = arith.constant 1.000000e+00 : f32
    %562 = vector.broadcast %cst_123 : f32 to vector<8x128xf32>
    %563 = arith.addf %562, %561 : vector<8x128xf32>
    %564 = arith.divf %562, %563 : vector<8x128xf32>
    %565 = math.tanh %559 : vector<8x128xf32>
    %566 = vector.extract_strided_slice %564 {offsets = [0, 0], sizes = [8, 32], strides = [1, 1]} : vector<8x128xf32> to vector<8x32xf32>
    %567 = vector.extract_strided_slice %564 {offsets = [0, 32], sizes = [8, 32], strides = [1, 1]} : vector<8x128xf32> to vector<8x32xf32>
    %568 = vector.extract_strided_slice %564 {offsets = [0, 96], sizes = [8, 32], strides = [1, 1]} : vector<8x128xf32> to vector<8x32xf32>
    %569 = vector.extract_strided_slice %565 {offsets = [0, 64], sizes = [8, 32], strides = [1, 1]} : vector<8x128xf32> to vector<8x32xf32>
    %570 = arith.mulf %567, %500 : vector<8x32xf32>
    %571 = arith.mulf %566, %569 : vector<8x32xf32>
    %572 = arith.addf %570, %571 : vector<8x32xf32>
    %573 = math.tanh %572 : vector<8x32xf32>
    %574 = arith.mulf %568, %573 : vector<8x32xf32>
    %575 = arith.truncf %574 : vector<8x32xf32> to vector<8x32xbf16>
    %cst_124 = arith.constant dense<0.000000e+00> : vector<8x128xf32>
    %576 = tpu.matmul %575, %3, %cst_124 {dimension_numbers = #tpu.dot_dimension_numbers<[1], [0], [0], [1], [0, 0, 1, 1], [], []>} : vector<8x32xbf16>, vector<32x128xbf16>, vector<8x128xf32> -> vector<8x128xf32>
    %577 = arith.addf %576, %15 : vector<8x128xf32>
    %c7 = arith.constant 7 : index
    %c0_125 = arith.constant 0 : index
    %c0_126 = arith.constant 0 : index
    %578 = vector.load %arg1[%c7, %c0_125, %c0_126] : memref<8x8x128xf32, #tpu.memory_space<vmem>>, vector<1x8x128xf32>
    %579 = vector.shape_cast %578 : vector<1x8x128xf32> to vector<8x128xf32>
    %580 = arith.addf %577, %579 : vector<8x128xf32>
    %cst_127 = arith.constant dense<0xFF800000> : vector<8xf32>
    %581 = vector.multi_reduction <maximumf>, %580, %cst_127 [1] : vector<8x128xf32> to vector<8xf32>
    %582 = vector.shape_cast %581 : vector<8xf32> to vector<8x1xf32>
    %583 = vector.broadcast %582 : vector<8x1xf32> to vector<8x128xf32>
    %584 = arith.cmpf oge, %580, %583 : vector<8x128xf32>
    %c128_i32_128 = arith.constant 128 : i32
    %585 = vector.broadcast %c128_i32_128 : i32 to vector<8x128xi32>
    %586 = arith.select %584, %27, %585 : vector<8x128xi1>, vector<8x128xi32>
    %cst_129 = arith.constant dense<2147483647> : vector<8xi32>
    %587 = vector.multi_reduction <minsi>, %586, %cst_129 [1] : vector<8x128xi32> to vector<8xi32>
    %588 = vector.shape_cast %587 : vector<8xi32> to vector<8x1xi32>
    %c2_i32_130 = arith.constant 2 : i32
    %589 = vector.broadcast %c2_i32_130 : i32 to vector<8x1xi32>
    %590 = arith.cmpi eq, %588, %589 : vector<8x1xi32>
    %591 = arith.extui %590 : vector<8x1xi1> to vector<8x1xi32>
    %592 = arith.maxsi %520, %591 : vector<8x1xi32>
    %c0_i32_131 = arith.constant 0 : i32
    %593 = vector.broadcast %c0_i32_131 : i32 to vector<8x1xi32>
    %594 = arith.cmpi sgt, %592, %593 : vector<8x1xi32>
    %c0_i32_132 = arith.constant 0 : i32
    %595 = vector.broadcast %c0_i32_132 : i32 to vector<8x1xi32>
    %596 = arith.select %594, %595, %588 : vector<8x1xi1>, vector<8x1xi32>
    %c1_i32_133 = arith.constant 1 : i32
    %597 = vector.broadcast %c1_i32_133 : i32 to vector<8x1xi32>
    %598 = arith.subi %597, %592 : vector<8x1xi32>
    %599 = arith.addi %527, %598 : vector<8x1xi32>
    %c7_i32 = arith.constant 7 : i32
    %600 = vector.broadcast %c7_i32 : i32 to vector<8x8xi32>
    %601 = arith.cmpi eq, %28, %600 : vector<8x8xi32>
    %602 = vector.shape_cast %596 : vector<8x1xi32> to vector<8x1xi32>
    %603 = vector.broadcast %602 : vector<8x1xi32> to vector<8x8xi32>
    %604 = arith.select %601, %603, %532 : vector<8x8xi1>, vector<8x8xi32>
    %c0_134 = arith.constant 0 : index
    %c0_135 = arith.constant 0 : index
    %605 = vector.load %arg10[%c0_134, %c0_135] : memref<8x8xi32, #tpu.memory_space<vmem>>, vector<8x8xi32>
    tpu.vector_store %arg10[%c0_134, %c0_135], %604 {strides = array<i32>} : memref<8x8xi32, #tpu.memory_space<vmem>>, vector<8x8xi32>,
    %c0_136 = arith.constant 0 : index
    %c0_137 = arith.constant 0 : index
    %606 = vector.load %arg11[%c0_136, %c0_137] : memref<8x1xi32, #tpu.memory_space<vmem>>, vector<8x1xi32>
    tpu.vector_store %arg11[%c0_136, %c0_137], %599 {strides = array<i32>} : memref<8x1xi32, #tpu.memory_space<vmem>>, vector<8x1xi32>,
    return
  }
}

</mosaic_0001>

<bundles_post_ra>
// kernel: sample.3
= control target key start
LH: loop header
LB: loop body
LE: loop exit
PB: predicated region body
PF: predicated region fallthrough
CT: control target
= control target key end

     0   :  { %vm85_vm0 = vcmask 130048   ;;  %s2502_s0 = inlined_call_operand.vmem [shape: f32[8,16], index: 0, kind: input, shape index: {}]   ;;  %s2503_s1 = inlined_call_operand.vmem [shape: f32[8,8,128], index: 1, kind: input, shape index: {}]   ;;  %s2504_s2 = inlined_call_operand.vmem [shape: bf16[16,32], index: 2, kind: input, shape index: {}]   ;;  %s2505_s3 = inlined_call_operand.vmem [shape: f32[1,32], index: 3, kind: input, shape index: {}]   ;;  %s2506_s4 = inlined_call_operand.vmem [shape: bf16[64,128], index: 4, kind: input, shape index: {}]   ;;  %s2507_s5 = inlined_call_operand.vmem [shape: f32[1,128], index: 5, kind: input, shape index: {}]   ;;  %s2508_s6 = inlined_call_operand.vmem [shape: bf16[64,128], index: 6, kind: input, shape index: {}]   ;;  %s2509_s7 = inlined_call_operand.vmem [shape: f32[1,128], index: 7, kind: input, shape index: {}]   ;;  %s2510_s8 = inlined_call_operand.vmem [shape: bf16[32,128], index: 8, kind: input, shape index: {}]   ;;  %s2511_s9 = inlined_call_operand.vmem [shape: f32[1,128], index: 9, kind: input, shape index: {}]   ;;  %s2512_s10 = inlined_call_operand.hbm [shape: s32[8,8], index: 10, kind: output, shape index: {0}]   ;;  %s2513_s11 = inlined_call_operand.vmem [shape: s32[8,1], index: 11, kind: output, shape index: {1}]  }
   0x1   :  { %v1684_v0 = vld [vmem:[%s2504_s2] sm:$0xff] }
   0x2   :  { %v77_v1 = vld [vmem:[%s2502_s0] sm:$0xff]  ;;  %96 = vmatpush.bf16.msra.mxu0 %v1684_v0 }
   0x3   :  { %v78_v2 = vpack.c.bf16 %v77_v1, %v77_v1 }
   0x4   :  { %17 = vsyncpa [#allocation3], 0  ;;  %v1945_v3 = vld [vmem:[%s2506_s4 + $0x18] sm:$0xff]  ;;  %v1951_v4 = vld [vmem:[%s2506_s4 + $0x10] sm:$0xff]  ;;  %s1871_s27 = smov 32   ;;  %v103_v12 = vlaneseq  ;;  %v1872_v14 = vmov 0.0  }
   0x5   :  { %1588 = vmatmul.msk.bf16.vlgmr.msra.gmra.mxu0 %vm85_vm0, %v78_v2  ;;  %147 = vmatpush.bf16.msra.mxu1 %v1945_v3  ;;  %v1958_v5 = vld [vmem:[%s2506_s4 + $0x8] sm:$0xff]  ;;  %v1700_v6 = vld [vmem:[%s2505_s3] ss:$0 sm:$0xff]  ;;  %vm112_vm2 = vcmask 261120   ;;  %vm139_vm3 = vcmask 523264   ;;  %s1873_s12 = smov 64  }
   0x6   :  { %351 = vmatpush.bf16.msrb.mxu0 %v1945_v3  ;;  %v1970_v11 = vld [vmem:[%s2506_s4] sm:$0xff]  ;;  %v1974_v13 = vand.u32 127, %v103_v12  ;;  %v2001_v43 = vld [vmem:[%s2508_s6 + $0x18] sm:$0xff]  ;;  %v2007_v44 = vld [vmem:[%s2508_s6 + $0x10] sm:$0xff]  ;;  %s1571_s0 = sshll.u32 %s2512_s10, 4  ;;  %s1572_s0 = int_to_ptr.hbm [resolvable:$true] %s1571_s0 }
   0x7   :  { %v1988_v19 = vld [vmem:[%s2507_s5] ss:$0 sm:$0xff]  ;;  %230 = vmatpush.bf16.msra.mxu2 %v2001_v43  ;;  %v2014_v45 = vld [vmem:[%s2508_s6 + $0x8] sm:$0xff] }
   0x8   :  { %vm105_vm1 = vcmp.eq.s32.totalorder %v1974_v13, 1  ;;  %v2026_v48 = vld [vmem:[%s2508_s6] sm:$0xff] }
   0x9   :  { %148 = vmatpush.bf16.msra.mxu1 %v1951_v4  ;;  %v1589_v15 = vsel %vm105_vm1, 1.0, %v1872_v14  ;;  %v2044_v52 = vld [vmem:[%s2509_s7] ss:$0 sm:$0xff] }
   0xa   :  { %352 = vmatpush.bf16.msrb.mxu0 %v1951_v4 }
   0xb   :  { %231 = vmatpush.bf16.msra.mxu2 %v2007_v44 }
   0xd   :  { %149 = vmatpush.bf16.msra.mxu1 %v1958_v5 }
   0xe   :  { %353 = vmatpush.bf16.msrb.mxu0 %v1958_v5 }
   0xf   :  { %232 = vmatpush.bf16.msra.mxu2 %v2014_v45 }
  0x11   :  { %150 = vmatpush.bf16.msra.mxu1 %v1970_v11 }
  0x12   :  { %354 = vmatpush.bf16.msrb.mxu0 %v1970_v11 }
  0x13   :  { %233 = vmatpush.bf16.msra.mxu2 %v2026_v48 }
  0x16   :  { %588 = vmatpush.bf16.msra.mxu0 %v2001_v43 }
  0x17   :  { %525 = vmatpush.bf16.msrb.mxu2 %v1945_v3 }
  0x1a   :  { %589 = vmatpush.bf16.msra.mxu0 %v2007_v44 }
  0x1b   :  { %526 = vmatpush.bf16.msrb.mxu2 %v1951_v4 }
  0x1e   :  { %590 = vmatpush.bf16.msra.mxu0 %v2014_v45 }
  0x1f   :  { %527 = vmatpush.bf16.msrb.mxu2 %v1958_v5 }
  0x22   :  { %591 = vmatpush.bf16.msra.mxu0 %v2026_v48 }
  0x23   :  { %528 = vmatpush.bf16.msrb.mxu2 %v1970_v11 }
  0x82   :  { %v98_v7 = vpop.f32.mrf.mxu0 }
  0x83   :  { %v99_v8 = vadd.f32 %v1700_v6, %v98_v7 }
  0x85   :  { %v102_v9 = vmax.f32 %v99_v8, 0.0 }
  0x87   :  { %109 = vrot.lane.b32.xlu0 %v102_v9, %s1871_s27 }
  0x8a   :  { %v100_v10 = vpop.f32.mrf.mxu0 }
  0xf9   :  { %v1980_v16 = vpop.permute.xlu0 %109 }
  0xfa   :  { %v113_v17 = vsel %vm112_vm2, %v1589_v15, %v1980_v16 }
  0xfb   :  { %v114_v18 = vpack.c.bf16 %v113_v17, %v113_v17 }
  0xfd   :  { %1606 = vmatmul.msk.bf16.vlgmr.msra.gmra.mxu1 %vm139_vm3, %v114_v18 }
 0x17a   :  { %v152_v20 = vpop.f32.mrf.mxu1 }
 0x17b   :  { %v153_v21 = vadd.f32 %v1988_v19, %v152_v20  ;;  %v2057_v20 = vld [vmem:[%s2510_s8 + $0x8] sm:$0xff] }
 0x17c   :  { %301 = vmatpush.bf16.msra.mxu3 %v2057_v20  ;;  %473 = vmatpush.bf16.msrb.mxu1 %v2057_v20 }
 0x17d   :  { %1704 = vtanh.f32 %v153_v21  ;;  %v1607_v24 = vmul.f32 -1.442695, %v153_v21  ;;  %v2063_v21 = vld [vmem:[%s2510_s8] sm:$0xff] }
 0x17f   :  { %1706 = vpow2.f32 %v1607_v24 }
 0x180   :  { %302 = vmatpush.bf16.msra.mxu3 %v2063_v21  ;;  %474 = vmatpush.bf16.msrb.mxu1 %v2063_v21 }
 0x182   :  { %v154_v22 = vpop.f32.mrf.mxu1 }
 0x183   :  { %v1705_v23 = vpop.eup %1704 }
 0x184   :  { %178 = vrot.lane.b32.xlu0 %v1705_v23, %s1873_s12  ;;  %414 = vmatpush.bf16.msrb.mxu3 %v2001_v43 }
 0x185   :  { %v1707_v25 = vpop.eup %1706  ;;  %700 = vmatpush.bf16.msra.mxu1 %v1945_v3 }
 0x186   :  { %v159_v26 = vadd.f32 1.0, %v1707_v25  ;;  %v2087_v25 = vld [vmem:[%s2511_s9] ss:$0 sm:$0xff] }
 0x188   :  { %1708 = vrcp.f32 %v159_v26  ;;  %v171_v32 = vand.u32 2147483648, %v159_v26  ;;  %vm165_vm5 = vweird.f32 %v159_v26  ;;  %v169_v33 = vand.u32 2147483647, %v159_v26  ;;  %415 = vmatpush.bf16.msrb.mxu3 %v2007_v44 }
 0x189   :  { %701 = vmatpush.bf16.msra.mxu1 %v1951_v4 }
 0x18a   :  { %v172_v35 = vor.u32 1.1754944e-38, %v171_v32  ;;  %vm170_vm7 = vcmp.eq.f32.partialorder %v169_v33, 8.507059e+37 }
 0x18c   :  { %416 = vmatpush.bf16.msrb.mxu3 %v2014_v45 }
 0x18d   :  { %702 = vmatpush.bf16.msra.mxu1 %v1958_v5 }
 0x18e   :  { %v1709_v27 = vpop.eup %1708 }
 0x18f   :  { %v161_v28 = vmul.f32 %v1709_v27, %v159_v26  ;;  %vm166_vm4 = vweird.f32 %v1709_v27 }
 0x190   :  { %vm167_vm6 = vmor %vm165_vm5, %vm166_vm4  ;;  %417 = vmatpush.bf16.msrb.mxu3 %v2026_v48 }
 0x191   :  { %v162_v29 = vsub.f32 1.0, %v161_v28  ;;  %703 = vmatpush.bf16.msra.mxu1 %v1970_v11 }
 0x193   :  { %v163_v30 = vmul.f32 %v1709_v27, %v162_v29 }
 0x195   :  { %v164_v31 = vadd.f32 %v1709_v27, %v163_v30 }
 0x197   :  { %v168_v34 = vsel %vm167_vm6, %v1709_v27, %v164_v31  ;;  %v308_v27 = vld [vmem:[%s2503_s1] sm:$0xff] }
 0x198   :  { %v173_v37 = vsel %vm170_vm7, %v172_v35, %v168_v34 }
 0x199   :  { %v176_v39 = vmul.f32 %v173_v37, %v1980_v16 }
 0x1f6   :  { %v179_v36 = vpop.permute.xlu0 %178 }
 0x1f7   :  { %v181_v38 = vmul.f32 %v179_v36, %v173_v37 }
 0x1f9   :  { %183 = vrot.lane.b32.xlu1 %v181_v38, %s1871_s27 }
 0x26b   :  { %v184_v40 = vpop.permute.xlu1 %183 }
 0x26c   :  { %v1994_v41 = vadd.f32 %v184_v40, %v176_v39 }
 0x26e   :  { %1710 = vtanh.f32 %v1994_v41 }
 0x274   :  { %v1711_v42 = vpop.eup %1710 }
 0x275   :  { %189 = vrot.lane.b32.xlu1 %v1711_v42, %s1873_s12 }
 0x2e7   :  { %v190_v46 = vpop.permute.xlu1 %189 }
 0x2e8   :  { %v2019_v47 = vmul.f32 %v190_v46, %v173_v37 }
 0x2ea   :  { %194 = vrot.lane.b32.xlu2 %v2019_v47, %s1871_s27 }
 0x344   :  { %v195_v49 = vpop.permute.xlu2 %194 }
 0x345   :  { %v197_v50 = vsel %vm112_vm2, %v195_v49, %v1980_v16 }
 0x346   :  { %v198_v51 = vpack.c.bf16 %v197_v50, %v197_v50  ;;  %v1874_v50 = vmov 0  }
 0x348   :  { %1624 = vmatmul.msk.bf16.vlgmr.msra.gmra.mxu2 %vm139_vm3, %v198_v51 }
 0x349   :  { %763 = vmatpush.bf16.msra.mxu2 %v2001_v43 }
 0x34d   :  { %764 = vmatpush.bf16.msra.mxu2 %v2007_v44 }
 0x351   :  { %765 = vmatpush.bf16.msra.mxu2 %v2014_v45 }
 0x355   :  { %766 = vmatpush.bf16.msra.mxu2 %v2026_v48 }
 0x3cb   :  { %v235_v53 = vpop.f32.mrf.mxu2 }
 0x3cc   :  { %v236_v54 = vadd.f32 %v2044_v52, %v235_v53 }
 0x3ce   :  { %1712 = vtanh.f32 %v236_v54  ;;  %v1625_v57 = vmul.f32 -1.442695, %v236_v54 }
 0x3d0   :  { %1714 = vpow2.f32 %v1625_v57 }
 0x3d3   :  { %v237_v55 = vpop.f32.mrf.mxu2 }
 0x3d4   :  { %v1713_v56 = vpop.eup %1712 }
 0x3d5   :  { %261 = vrot.lane.b32.xlu2 %v1713_v56, %s1873_s12 }
 0x3d6   :  { %v1715_v58 = vpop.eup %1714 }
 0x3d7   :  { %v242_v59 = vadd.f32 1.0, %v1715_v58 }
 0x3d9   :  { %1716 = vrcp.f32 %v242_v59  ;;  %v254_v1 = vand.u32 2147483648, %v242_v59  ;;  %vm248_vm9 = vweird.f32 %v242_v59  ;;  %v252_v2 = vand.u32 2147483647, %v242_v59 }
 0x3db   :  { %v255_v7 = vor.u32 1.1754944e-38, %v254_v1  ;;  %vm253_vm11 = vcmp.eq.f32.partialorder %v252_v2, 8.507059e+37 }
 0x3df   :  { %v1717_v60 = vpop.eup %1716 }
 0x3e0   :  { %v244_v61 = vmul.f32 %v1717_v60, %v242_v59  ;;  %vm249_vm8 = vweird.f32 %v1717_v60 }
 0x3e1   :  { %vm250_vm10 = vmor %vm248_vm9, %vm249_vm8 }
 0x3e2   :  { %v245_v62 = vsub.f32 1.0, %v244_v61 }
 0x3e4   :  { %v246_v63 = vmul.f32 %v1717_v60, %v245_v62 }
 0x3e6   :  { %v247_v0 = vadd.f32 %v1717_v60, %v246_v63 }
 0x3e8   :  { %v251_v6 = vsel %vm250_vm10, %v1717_v60, %v247_v0 }
 0x3e9   :  { %v256_v9 = vsel %vm253_vm11, %v255_v7, %v251_v6 }
 0x3ea   :  { %v259_v12 = vmul.f32 %v256_v9, %v1980_v16 }
 0x42f   :  { %v262_v8 = vpop.permute.xlu2 %261 }
 0x430   :  { %v264_v10 = vmul.f32 %v262_v8, %v256_v9 }
 0x432   :  { %266 = vrot.lane.b32.xlu0 %v264_v10, %s1871_s27 }
 0x4a4   :  { %v267_v15 = vpop.permute.xlu0 %266 }
 0x4a5   :  { %v2050_v17 = vadd.f32 %v267_v15, %v259_v12 }
 0x4a7   :  { %1718 = vtanh.f32 %v2050_v17 }
 0x4ad   :  { %v1719_v18 = vpop.eup %1718 }
 0x4ae   :  { %272 = vrot.lane.b32.xlu1 %v1719_v18, %s1873_s12 }
 0x520   :  { %v273_v16 = vpop.permute.xlu1 %272 }
 0x521   :  { %v2076_v22 = vmul.f32 %v273_v16, %v256_v9 }
 0x523   :  { %v276_v23 = vpack.c.bf16 %v2076_v22, %v2076_v22 }
 0x525   :  { %278 = vrot.lane.b32.xlu2 %v276_v23, %s1871_s27 }
 0x57f   :  { %v279_v24 = vpop.permute.xlu2 %278 }
 0x580   :  { %1634 = vmatmul.msk.bf16.vlgmr.msra.gmra.mxu3 %vm112_vm2, %v279_v24 }
 0x581   :  { %647 = vmatpush.bf16.msra.mxu3 %v2057_v20 }
 0x585   :  { %648 = vmatpush.bf16.msra.mxu3 %v2063_v21 }
 0x603   :  { %v304_v26 = vpop.f32.mrf.mxu3 }
 0x604   :  { %v305_v28 = vadd.f32 %v2087_v25, %v304_v26 }
 0x606   :  { %v309_v29 = vadd.f32 %v308_v27, %v305_v28 }
 0x608   :  { %310 = vmax.xlane.f32.xlu0 %v309_v29 }
 0x60b   :  { %v306_v30 = vpop.f32.mrf.mxu3 }
 0x67b   :  { %v311_v31 = vpop.xlane.xlu0 %310 }
 0x67c   :  { %vm312_vm12 = vcmp.ge.f32.partialorder %v309_v29, %v311_v31 }
 0x67d   :  { %v313_v32 = vsel %vm312_vm12, %v1974_v13, 128 }
 0x67e   :  { %v315_v33 = vshra.s32 %v313_v32, 16  ;;  %v314_v35 = vand.u32 65535, %v313_v32 }
 0x680   :  { %v317_v34 = vcvt.s32.f32 %v315_v33  ;;  %v316_v37 = vcvt.s32.f32 %v314_v35 }
 0x682   :  { %318 = vmin.xlane.f32.xlu1 %v317_v34 }
 0x6f5   :  { %v319_v36 = vpop.xlane.xlu1 %318 }
 0x6f6   :  { %vm320_vm13 = vcmp.eq.f32.partialorder %v317_v34, %v319_v36  ;;  %v325_v39 = vcvt.f32.s32 %v319_v36 }
 0x6f7   :  { %v321_v38 = vsel %vm320_vm13, %v316_v37, inf }
 0x6f8   :  { %322 = vmin.xlane.f32.xlu2 %v321_v38  ;;  %v326_v42 = vshll.u32 %v325_v39, 16 }
 0x710   :  { %339 = vrot.lane.b32.xlu2 %v2019_v47, %s1873_s12 }
 0x76b   :  { %v323_v40 = vpop.xlane.xlu2 %322 }
 0x76c   :  { %v324_v46 = vcvt.f32.s32 %v323_v40 }
 0x76e   :  { %v327_v49 = vadd.s32 %v326_v42, %v324_v46 }
 0x770   :  { %vm328_vm14 = vcmp.eq.s32.totalorder %v327_v49, 2 }
 0x771   :  { %v329_v51 = vsel %vm328_vm14, 1, %v1874_v50 }
 0x772   :  { %v2097_v53 = vsel %vm328_vm14, %v329_v51, 0 }
 0x773   :  { %vm331_vm15 = vcmp.gt.s32.totalorder %v2097_v53, 0  ;;  %v340_v55 = vpop.permute.xlu2 %339 }
 0x774   :  { %v2100_v54 = vsel %vm331_vm15, 0, %v327_v49  ;;  %vm334_vm15 = vcmp.eq.s32.totalorder %v1974_v13, 0 }
 0x775   :  { %vm336_vm0 = vcmp.eq.s32.totalorder %v1974_v13, %v2100_v54 }
 0x776   :  { %v1635_v47 = vsel %vm336_vm0, 1.0, %v1872_v14 }
 0x777   :  { %v342_v56 = vsel %vm112_vm2, %v1635_v47, %v340_v55 }
 0x778   :  { %v343_v57 = vpack.c.bf16 %v342_v56, %v342_v56 }
 0x77a   :  { %1636 = vmatmul.msk.bf16.vlgmr.msrb.gmra.mxu0 %vm139_vm3, %v343_v57 }
 0x77b   :  { %822 = vmatpush.bf16.msrb.mxu0 %v2057_v20 }
 0x77f   :  { %823 = vmatpush.bf16.msrb.mxu0 %v2063_v21 }
 0x7f7   :  { %v356_v58 = vpop.f32.mrf.mxu0 }
 0x7f8   :  { %v357_v59 = vadd.f32 %v1988_v19, %v356_v58 }
 0x7fa   :  { %1720 = vtanh.f32 %v357_v59  ;;  %v1637_v62 = vmul.f32 -1.442695, %v357_v59 }
 0x7fc   :  { %1722 = vpow2.f32 %v1637_v62 }
 0x7ff   :  { %v358_v60 = vpop.f32.mrf.mxu0 }
 0x800   :  { %v1721_v61 = vpop.eup %1720 }
 0x801   :  { %382 = vrot.lane.b32.xlu0 %v1721_v61, %s1873_s12 }
 0x802   :  { %v1723_v63 = vpop.eup %1722 }
 0x803   :  { %v363_v0 = vadd.f32 1.0, %v1723_v63 }
 0x805   :  { %1724 = vrcp.f32 %v363_v0  ;;  %v375_v9 = vand.u32 2147483648, %v363_v0  ;;  %vm369_vm5 = vweird.f32 %v363_v0  ;;  %v373_v10 = vand.u32 2147483647, %v363_v0 }
 0x807   :  { %v376_v15 = vor.u32 1.1754944e-38, %v375_v9  ;;  %vm374_vm7 = vcmp.eq.f32.partialorder %v373_v10, 8.507059e+37 }
 0x80b   :  { %v1725_v1 = vpop.eup %1724 }
 0x80c   :  { %v365_v2 = vmul.f32 %v1725_v1, %v363_v0  ;;  %vm370_vm4 = vweird.f32 %v1725_v1 }
 0x80d   :  { %vm371_vm6 = vmor %vm369_vm5, %vm370_vm4 }
 0x80e   :  { %v366_v6 = vsub.f32 1.0, %v365_v2 }
 0x810   :  { %v367_v7 = vmul.f32 %v1725_v1, %v366_v6 }
 0x812   :  { %v368_v8 = vadd.f32 %v1725_v1, %v367_v7 }
 0x814   :  { %v372_v12 = vsel %vm371_vm6, %v1725_v1, %v368_v8  ;;  %v1641_v8 = vld [vmem:[%s2503_s1 + $0x8] sm:$0xff] }
 0x815   :  { %v377_v16 = vsel %vm374_vm7, %v376_v15, %v372_v12 }
 0x816   :  { %v380_v24 = vmul.f32 %v377_v16, %v1994_v41 }
 0x873   :  { %v383_v18 = vpop.permute.xlu0 %382 }
 0x874   :  { %v385_v23 = vmul.f32 %v383_v18, %v377_v16 }
 0x876   :  { %387 = vrot.lane.b32.xlu1 %v385_v23, %s1871_s27 }
 0x87e   :  { %402 = vrot.lane.b32.xlu1 %v2076_v22, %s1873_s12 }
 0x8e8   :  { %v388_v26 = vpop.permute.xlu1 %387 }
 0x8e9   :  { %v2115_v27 = vadd.f32 %v388_v26, %v380_v24 }
 0x8eb   :  { %1726 = vtanh.f32 %v2115_v27 }
 0x8f0   :  { %v403_v31 = vpop.permute.xlu1 %402 }
 0x8f1   :  { %v1727_v28 = vpop.eup %1726 }
 0x8f2   :  { %393 = vrot.lane.b32.xlu0 %v1727_v28, %s1873_s12 }
 0x964   :  { %v394_v29 = vpop.permute.xlu0 %393 }
 0x965   :  { %v396_v30 = vmul.f32 %v394_v29, %v377_v16 }
 0x967   :  { %398 = vrot.lane.b32.xlu2 %v396_v30, %s1871_s27 }
 0x9c1   :  { %v399_v32 = vpop.permute.xlu2 %398 }
 0x9c2   :  { %v405_v33 = vsel %vm112_vm2, %v399_v32, %v403_v31 }
 0x9c3   :  { %v406_v34 = vpack.c.bf16 %v405_v33, %v405_v33 }
 0x9c5   :  { %1638 = vmatmul.msk.bf16.vlgmr.msrb.gmra.mxu3 %vm139_vm3, %v406_v34 }
 0x9c6   :  { %875 = vmatpush.bf16.msrb.mxu3 %v1945_v3 }
 0x9ca   :  { %876 = vmatpush.bf16.msrb.mxu3 %v1951_v4 }
 0x9ce   :  { %877 = vmatpush.bf16.msrb.mxu3 %v1958_v5 }
 0x9d2   :  { %878 = vmatpush.bf16.msrb.mxu3 %v1970_v11 }
 0xa48   :  { %v419_v41 = vpop.f32.mrf.mxu3 }
 0xa49   :  { %v420_v22 = vadd.f32 %v2044_v52, %v419_v41 }
 0xa4b   :  { %1728 = vtanh.f32 %v420_v22  ;;  %v1639_v37 = vmul.f32 -1.442695, %v420_v22 }
 0xa4d   :  { %1730 = vpow2.f32 %v1639_v37 }
 0xa50   :  { %v421_v35 = vpop.f32.mrf.mxu3 }
 0xa51   :  { %v1729_v36 = vpop.eup %1728  ;;  %v335_v35 = vsel %vm334_vm15, %v2100_v54, 0 }
 0xa52   :  { %445 = vrot.lane.b32.xlu0 %v1729_v36, %s1873_s12 }
 0xa53   :  { %v1731_v38 = vpop.eup %1730 }
 0xa54   :  { %v426_v39 = vadd.f32 1.0, %v1731_v38 }
 0xa56   :  { %1732 = vrcp.f32 %v426_v39  ;;  %v438_v47 = vand.u32 2147483648, %v426_v39  ;;  %vm432_vm9 = vweird.f32 %v426_v39  ;;  %v436_v55 = vand.u32 2147483647, %v426_v39 }
 0xa58   :  { %v439_v57 = vor.u32 1.1754944e-38, %v438_v47  ;;  %vm437_vm11 = vcmp.eq.f32.partialorder %v436_v55, 8.507059e+37 }
 0xa5c   :  { %v1733_v40 = vpop.eup %1732 }
 0xa5d   :  { %v428_v42 = vmul.f32 %v1733_v40, %v426_v39  ;;  %vm433_vm8 = vweird.f32 %v1733_v40 }
 0xa5e   :  { %vm434_vm10 = vmor %vm432_vm9, %vm433_vm8 }
 0xa5f   :  { %v429_v46 = vsub.f32 1.0, %v428_v42 }
 0xa61   :  { %v430_v49 = vmul.f32 %v1733_v40, %v429_v46 }
 0xa63   :  { %v431_v51 = vadd.f32 %v1733_v40, %v430_v49 }
 0xa65   :  { %v435_v56 = vsel %vm434_vm10, %v1733_v40, %v431_v51 }
 0xa66   :  { %v440_v59 = vsel %vm437_vm11, %v439_v57, %v435_v56 }
 0xa67   :  { %v443_v61 = vmul.f32 %v440_v59, %v2050_v17 }
 0xac4   :  { %v446_v58 = vpop.permute.xlu0 %445 }
 0xac5   :  { %v448_v60 = vmul.f32 %v446_v58, %v440_v59 }
 0xac7   :  { %450 = vrot.lane.b32.xlu2 %v448_v60, %s1871_s27 }
 0xb21   :  { %v451_v62 = vpop.permute.xlu2 %450 }
 0xb22   :  { %v2130_v63 = vadd.f32 %v451_v62, %v443_v61 }
 0xb24   :  { %1734 = vtanh.f32 %v2130_v63 }
 0xb2a   :  { %v1735_v0 = vpop.eup %1734 }
 0xb2b   :  { %456 = vrot.lane.b32.xlu1 %v1735_v0, %s1873_s12 }
 0xb9d   :  { %v457_v1 = vpop.permute.xlu1 %456 }
 0xb9e   :  { %v459_v2 = vmul.f32 %v457_v1, %v440_v59 }
 0xba0   :  { %v460_v6 = vpack.c.bf16 %v459_v2, %v459_v2 }
 0xba2   :  { %462 = vrot.lane.b32.xlu0 %v460_v6, %s1871_s27 }
 0xc14   :  { %v463_v7 = vpop.permute.xlu0 %462 }
 0xc15   :  { %1640 = vmatmul.msk.bf16.vlgmr.msrb.gmra.mxu1 %vm112_vm2, %v463_v7 }
 0xc16   :  { %938 = vmatpush.bf16.msrb.mxu1 %v2001_v43 }
 0xc1a   :  { %939 = vmatpush.bf16.msrb.mxu1 %v2007_v44 }
 0xc1e   :  { %940 = vmatpush.bf16.msrb.mxu1 %v2014_v45 }
 0xc22   :  { %941 = vmatpush.bf16.msrb.mxu1 %v2026_v48 }
 0xc92   :  { %v476_v17 = vpop.f32.mrf.mxu1 }
 0xc93   :  { %v477_v9 = vadd.f32 %v2087_v25, %v476_v17 }
 0xc95   :  { %v482_v10 = vadd.f32 %v1641_v8, %v477_v9 }
 0xc97   :  { %483 = vmax.xlane.f32.xlu2 %v482_v10 }
 0xc9a   :  { %v478_v12 = vpop.f32.mrf.mxu1 }
 0xcaf   :  { %513 = vrot.lane.b32.xlu2 %v396_v30, %s1873_s12 }
 0xd0a   :  { %v484_v15 = vpop.xlane.xlu2 %483 }
 0xd0b   :  { %vm485_vm12 = vcmp.ge.f32.partialorder %v482_v10, %v484_v15 }
 0xd0c   :  { %v486_v18 = vsel %vm485_vm12, %v1974_v13, 128 }
 0xd0d   :  { %v488_v16 = vshra.s32 %v486_v18, 16  ;;  %v487_v24 = vand.u32 65535, %v486_v18 }
 0xd0f   :  { %v490_v23 = vcvt.s32.f32 %v488_v16  ;;  %v489_v28 = vcvt.s32.f32 %v487_v24 }
 0xd11   :  { %491 = vmin.xlane.f32.xlu1 %v490_v23 }
 0xd12   :  { %v514_v38 = vpop.permute.xlu2 %513 }
 0xd84   :  { %v492_v26 = vpop.xlane.xlu1 %491 }
 0xd85   :  { %vm493_vm13 = vcmp.eq.f32.partialorder %v490_v23, %v492_v26  ;;  %v498_v31 = vcvt.f32.s32 %v492_v26 }
 0xd86   :  { %v494_v29 = vsel %vm493_vm13, %v489_v28, inf }
 0xd87   :  { %495 = vmin.xlane.f32.xlu0 %v494_v29  ;;  %v499_v33 = vshll.u32 %v498_v31, 16 }
 0xdfa   :  { %v496_v32 = vpop.xlane.xlu0 %495 }
 0xdfb   :  { %v497_v34 = vcvt.f32.s32 %v496_v32 }
 0xdfd   :  { %v500_v41 = vadd.s32 %v499_v33, %v497_v34 }
 0xdff   :  { %vm501_vm14 = vcmp.eq.s32.totalorder %v500_v41, 2 }
 0xe00   :  { %v502_v30 = vsel %vm501_vm14, 1, %v1874_v50 }
 0xe01   :  { %vm503_vm0 = vcmp.gt.s32.totalorder %v2097_v53, %v502_v30 }
 0xe02   :  { %v2150_v22 = vsel %vm503_vm0, %v2097_v53, %v502_v30 }
 0xe03   :  { %vm505_vm4 = vcmp.gt.s32.totalorder %v2150_v22, 0 }
 0xe04   :  { %v506_v36 = vsel %vm505_vm4, 0, %v500_v41  ;;  %vm683_vm4 = vcmp.eq.s32.totalorder %v1974_v13, 2 }
 0xe05   :  { %v2156_v37 = vsel %vm105_vm1, %v506_v36, %v335_v35  ;;  %vm510_vm5 = vcmp.eq.s32.totalorder %v1974_v13, %v506_v36 }
 0xe06   :  { %v1642_v39 = vsel %vm510_vm5, 1.0, %v1872_v14 }
 0xe07   :  { %v516_v40 = vsel %vm112_vm2, %v1642_v39, %v514_v38 }
 0xe08   :  { %v517_v42 = vpack.c.bf16 %v516_v40, %v516_v40 }
 0xe0a   :  { %1643 = vmatmul.msk.bf16.vlgmr.msrb.gmra.mxu2 %vm139_vm3, %v517_v42 }
 0xe0b   :  { %997 = vmatpush.bf16.msrb.mxu2 %v2057_v20 }
 0xe0f   :  { %998 = vmatpush.bf16.msrb.mxu2 %v2063_v21 }
 0xe8d   :  { %v530_v54 = vpop.f32.mrf.mxu2 }
 0xe8e   :  { %v531_v46 = vadd.f32 %v1988_v19, %v530_v54 }
 0xe90   :  { %1736 = vtanh.f32 %v531_v46  ;;  %v1644_v47 = vmul.f32 -1.442695, %v531_v46 }
 0xe92   :  { %1738 = vpow2.f32 %v1644_v47 }
 0xe95   :  { %v532_v49 = vpop.f32.mrf.mxu2 }
 0xe96   :  { %v1737_v51 = vpop.eup %1736 }
 0xe97   :  { %556 = vrot.lane.b32.xlu1 %v1737_v51, %s1873_s12 }
 0xe98   :  { %v1739_v55 = vpop.eup %1738 }
 0xe99   :  { %v537_v56 = vadd.f32 1.0, %v1739_v55 }
 0xe9b   :  { %1740 = vrcp.f32 %v537_v56  ;;  %v549_v62 = vand.u32 2147483648, %v537_v56  ;;  %vm543_vm6 = vweird.f32 %v537_v56  ;;  %v547_v0 = vand.u32 2147483647, %v537_v56 }
 0xe9d   :  { %v550_v6 = vor.u32 1.1754944e-38, %v549_v62  ;;  %vm548_vm8 = vcmp.eq.f32.partialorder %v547_v0, 8.507059e+37  ;;  %v1648_v62 = vld [vmem:[%s2503_s1 + $0x10] sm:$0xff] }
 0xe9f   :  { %576 = vrot.lane.b32.xlu1 %v459_v2, %s1873_s12 }
 0xea1   :  { %v1741_v57 = vpop.eup %1740 }
 0xea2   :  { %v539_v58 = vmul.f32 %v1741_v57, %v537_v56  ;;  %vm544_vm1 = vweird.f32 %v1741_v57 }
 0xea3   :  { %vm545_vm7 = vmor %vm543_vm6, %vm544_vm1 }
 0xea4   :  { %v540_v59 = vsub.f32 1.0, %v539_v58 }
 0xea6   :  { %v541_v60 = vmul.f32 %v1741_v57, %v540_v59 }
 0xea8   :  { %v542_v61 = vadd.f32 %v1741_v57, %v541_v60 }
 0xeaa   :  { %v546_v1 = vsel %vm545_vm7, %v1741_v57, %v542_v61 }
 0xeab   :  { %v551_v2 = vsel %vm548_vm8, %v550_v6, %v546_v1 }
 0xeac   :  { %v554_v8 = vmul.f32 %v551_v2, %v2115_v27 }
 0xf09   :  { %v557_v7 = vpop.permute.xlu1 %556 }
 0xf0a   :  { %v559_v17 = vmul.f32 %v557_v7, %v551_v2 }
 0xf0c   :  { %561 = vrot.lane.b32.xlu0 %v559_v17, %s1871_s27 }
 0xf11   :  { %v577_v16 = vpop.permute.xlu1 %576 }
 0xf7e   :  { %v562_v9 = vpop.permute.xlu0 %561 }
 0xf7f   :  { %v2169_v10 = vadd.f32 %v562_v9, %v554_v8 }
 0xf81   :  { %1742 = vtanh.f32 %v2169_v10 }
 0xf87   :  { %v1743_v12 = vpop.eup %1742 }
 0xf88   :  { %567 = vrot.lane.b32.xlu2 %v1743_v12, %s1873_s12 }
 0xfe2   :  { %v568_v15 = vpop.permute.xlu2 %567 }
 0xfe3   :  { %v570_v18 = vmul.f32 %v568_v15, %v551_v2 }
 0xfe5   :  { %572 = vrot.lane.b32.xlu0 %v570_v18, %s1871_s27 }
0x1057   :  { %v573_v23 = vpop.permute.xlu0 %572 }
0x1058   :  { %v579_v24 = vsel %vm112_vm2, %v573_v23, %v577_v16 }
0x1059   :  { %v580_v26 = vpack.c.bf16 %v579_v24, %v579_v24 }
0x105b   :  { %1645 = vmatmul.msk.bf16.vlgmr.msra.gmra.mxu0 %vm139_vm3, %v580_v26 }
0x105c   :  { %1050 = vmatpush.bf16.msra.mxu0 %v1945_v3 }
0x1060   :  { %1051 = vmatpush.bf16.msra.mxu0 %v1951_v4 }
0x1064   :  { %1052 = vmatpush.bf16.msra.mxu0 %v1958_v5 }
0x1068   :  { %1053 = vmatpush.bf16.msra.mxu0 %v1970_v11 }
0x10d8   :  { %v593_v27 = vpop.f32.mrf.mxu0 }
0x10d9   :  { %v594_v28 = vadd.f32 %v2044_v52, %v593_v27 }
0x10db   :  { %1744 = vtanh.f32 %v594_v28  ;;  %v1646_v32 = vmul.f32 -1.442695, %v594_v28 }
0x10dd   :  { %1746 = vpow2.f32 %v1646_v32 }
0x10e0   :  { %v595_v29 = vpop.f32.mrf.mxu0 }
0x10e1   :  { %v1745_v31 = vpop.eup %1744 }
0x10e2   :  { %619 = vrot.lane.b32.xlu2 %v1745_v31, %s1873_s12 }
0x10e3   :  { %v1747_v33 = vpop.eup %1746 }
0x10e4   :  { %v600_v34 = vadd.f32 1.0, %v1747_v33 }
0x10e6   :  { %1748 = vrcp.f32 %v600_v34  ;;  %v612_v39 = vand.u32 2147483648, %v600_v34  ;;  %vm606_vm10 = vweird.f32 %v600_v34  ;;  %v610_v40 = vand.u32 2147483647, %v600_v34 }
0x10e8   :  { %v613_v54 = vor.u32 1.1754944e-38, %v612_v39  ;;  %vm611_vm12 = vcmp.eq.f32.partialorder %v610_v40, 8.507059e+37 }
0x10ec   :  { %v1749_v41 = vpop.eup %1748 }
0x10ed   :  { %v602_v30 = vmul.f32 %v1749_v41, %v600_v34  ;;  %vm607_vm9 = vweird.f32 %v1749_v41 }
0x10ee   :  { %vm608_vm11 = vmor %vm606_vm10, %vm607_vm9 }
0x10ef   :  { %v603_v35 = vsub.f32 1.0, %v602_v30 }
0x10f1   :  { %v604_v36 = vmul.f32 %v1749_v41, %v603_v35 }
0x10f3   :  { %v605_v38 = vadd.f32 %v1749_v41, %v604_v36 }
0x10f5   :  { %v609_v42 = vsel %vm608_vm11, %v1749_v41, %v605_v38 }
0x10f6   :  { %v614_v49 = vsel %vm611_vm12, %v613_v54, %v609_v42 }
0x10f7   :  { %v617_v47 = vmul.f32 %v614_v49, %v2130_v63 }
0x113c   :  { %v620_v46 = vpop.permute.xlu2 %619 }
0x113d   :  { %v622_v51 = vmul.f32 %v620_v46, %v614_v49 }
0x113f   :  { %624 = vrot.lane.b32.xlu0 %v622_v51, %s1871_s27 }
0x11b1   :  { %v625_v55 = vpop.permute.xlu0 %624 }
0x11b2   :  { %v2184_v56 = vadd.f32 %v625_v55, %v617_v47 }
0x11b4   :  { %1750 = vtanh.f32 %v2184_v56 }
0x11ba   :  { %v1751_v57 = vpop.eup %1750 }
0x11bb   :  { %630 = vrot.lane.b32.xlu1 %v1751_v57, %s1873_s12 }
0x122d   :  { %v631_v58 = vpop.permute.xlu1 %630 }
0x122e   :  { %v2188_v59 = vmul.f32 %v631_v58, %v614_v49 }
0x1230   :  { %v634_v60 = vpack.c.bf16 %v2188_v59, %v2188_v59 }
0x1232   :  { %636 = vrot.lane.b32.xlu2 %v634_v60, %s1871_s27 }
0x128c   :  { %v637_v61 = vpop.permute.xlu2 %636 }
0x128d   :  { %1647 = vmatmul.msk.bf16.vlgmr.msra.gmra.mxu3 %vm112_vm2, %v637_v61 }
0x128e   :  { %1113 = vmatpush.bf16.msra.mxu3 %v2001_v43 }
0x1292   :  { %1114 = vmatpush.bf16.msra.mxu3 %v2007_v44 }
0x1296   :  { %1115 = vmatpush.bf16.msra.mxu3 %v2014_v45 }
0x129a   :  { %1116 = vmatpush.bf16.msra.mxu3 %v2026_v48 }
0x1310   :  { %v650_v63 = vpop.f32.mrf.mxu3 }
0x1311   :  { %v651_v0 = vadd.f32 %v2087_v25, %v650_v63 }
0x1313   :  { %v656_v1 = vadd.f32 %v1648_v62, %v651_v0 }
0x1315   :  { %657 = vmax.xlane.f32.xlu0 %v656_v1 }
0x1318   :  { %v652_v6 = vpop.f32.mrf.mxu3 }
0x1329   :  { %688 = vrot.lane.b32.xlu0 %v570_v18, %s1873_s12 }
0x1388   :  { %v658_v7 = vpop.xlane.xlu0 %657 }
0x1389   :  { %vm659_vm13 = vcmp.ge.f32.partialorder %v656_v1, %v658_v7 }
0x138a   :  { %v660_v2 = vsel %vm659_vm13, %v1974_v13, 128 }
0x138b   :  { %v662_v17 = vshra.s32 %v660_v2, 16  ;;  %v661_v9 = vand.u32 65535, %v660_v2 }
0x138d   :  { %v664_v8 = vcvt.s32.f32 %v662_v17  ;;  %v663_v15 = vcvt.s32.f32 %v661_v9 }
0x138f   :  { %665 = vmin.xlane.f32.xlu1 %v664_v8 }
0x139b   :  { %v689_v33 = vpop.permute.xlu0 %688 }
0x1402   :  { %v666_v12 = vpop.xlane.xlu1 %665 }
0x1403   :  { %vm667_vm14 = vcmp.eq.f32.partialorder %v664_v8, %v666_v12  ;;  %v672_v23 = vcvt.f32.s32 %v666_v12 }
0x1404   :  { %v668_v16 = vsel %vm667_vm14, %v663_v15, inf }
0x1405   :  { %669 = vmin.xlane.f32.xlu2 %v668_v16  ;;  %v673_v26 = vshll.u32 %v672_v23, 16 }
0x1478   :  { %v670_v24 = vpop.xlane.xlu2 %669 }
0x1479   :  { %v671_v27 = vcvt.f32.s32 %v670_v24 }
0x147b   :  { %v674_v28 = vadd.s32 %v673_v26, %v671_v27 }
0x147d   :  { %vm675_vm15 = vcmp.eq.s32.totalorder %v674_v28, 2 }
0x147e   :  { %v676_v18 = vsel %vm675_vm15, 1, %v1874_v50 }
0x147f   :  { %vm677_vm0 = vcmp.gt.s32.totalorder %v2150_v22, %v676_v18 }
0x1480   :  { %v2208_v29 = vsel %vm677_vm0, %v2150_v22, %v676_v18 }
0x1481   :  { %vm679_vm5 = vcmp.gt.s32.totalorder %v2208_v29, 0 }
0x1482   :  { %v680_v31 = vsel %vm679_vm5, 0, %v674_v28  ;;  %vm858_vm5 = vcmp.eq.s32.totalorder %v1974_v13, 3 }
0x1483   :  { %v2212_v32 = vsel %vm683_vm4, %v680_v31, %v2156_v37  ;;  %vm685_vm1 = vcmp.eq.s32.totalorder %v1974_v13, %v680_v31 }
0x1484   :  { %v1649_v34 = vsel %vm685_vm1, 1.0, %v1872_v14 }
0x1485   :  { %v691_v41 = vsel %vm112_vm2, %v1649_v34, %v689_v33 }
0x1486   :  { %v692_v30 = vpack.c.bf16 %v691_v41, %v691_v41 }
0x1488   :  { %1650 = vmatmul.msk.bf16.vlgmr.msra.gmra.mxu1 %vm139_vm3, %v692_v30 }
0x1489   :  { %1172 = vmatpush.bf16.msra.mxu1 %v2057_v20 }
0x148d   :  { %1173 = vmatpush.bf16.msra.mxu1 %v2063_v21 }
0x1505   :  { %v705_v35 = vpop.f32.mrf.mxu1 }
0x1506   :  { %v706_v36 = vadd.f32 %v1988_v19, %v705_v35 }
0x1508   :  { %1752 = vtanh.f32 %v706_v36  ;;  %v1651_v39 = vmul.f32 -1.442695, %v706_v36 }
0x150a   :  { %1754 = vpow2.f32 %v1651_v39 }
0x150d   :  { %v707_v37 = vpop.f32.mrf.mxu1 }
0x150e   :  { %v1753_v38 = vpop.eup %1752 }
0x150f   :  { %731 = vrot.lane.b32.xlu1 %v1753_v38, %s1873_s12 }
0x1510   :  { %v1755_v40 = vpop.eup %1754 }
0x1511   :  { %v712_v42 = vadd.f32 1.0, %v1755_v40 }
0x1513   :  { %1756 = vrcp.f32 %v712_v42  ;;  %v724_v55 = vand.u32 2147483648, %v712_v42  ;;  %vm718_vm7 = vweird.f32 %v712_v42  ;;  %v722_v57 = vand.u32 2147483647, %v712_v42 }
0x1515   :  { %v725_v58 = vor.u32 1.1754944e-38, %v724_v55  ;;  %vm723_vm9 = vcmp.eq.f32.partialorder %v722_v57, 8.507059e+37 }
0x1519   :  { %v1757_v54 = vpop.eup %1756 }
0x151a   :  { %v714_v46 = vmul.f32 %v1757_v54, %v712_v42  ;;  %vm719_vm6 = vweird.f32 %v1757_v54 }
0x151b   :  { %vm720_vm8 = vmor %vm718_vm7, %vm719_vm6 }
0x151c   :  { %v715_v49 = vsub.f32 1.0, %v714_v46 }
0x151e   :  { %v716_v51 = vmul.f32 %v1757_v54, %v715_v49 }
0x1520   :  { %v717_v47 = vadd.f32 %v1757_v54, %v716_v51 }
0x1522   :  { %v721_v19 = vsel %vm720_vm8, %v1757_v54, %v717_v47  ;;  %v1655_v54 = vld [vmem:[%s2503_s1 + $0x18] sm:$0xff] }
0x1523   :  { %v726_v61 = vsel %vm723_vm9, %v725_v58, %v721_v19 }
0x1524   :  { %v729_v62 = vmul.f32 %v726_v61, %v2169_v10 }
0x1581   :  { %v732_v60 = vpop.permute.xlu1 %731 }
0x1582   :  { %v734_v63 = vmul.f32 %v732_v60, %v726_v61 }
0x1584   :  { %736 = vrot.lane.b32.xlu2 %v734_v63, %s1871_s27 }
0x15de   :  { %v737_v0 = vpop.permute.xlu2 %736 }
0x15df   :  { %v2224_v1 = vadd.f32 %v737_v0, %v729_v62 }
0x15e1   :  { %1758 = vtanh.f32 %v2224_v1 }
0x15e7   :  { %v1759_v6 = vpop.eup %1758 }
0x15e8   :  { %742 = vrot.lane.b32.xlu0 %v1759_v6, %s1873_s12 }
0x15f0   :  { %751 = vrot.lane.b32.xlu0 %v2188_v59, %s1873_s12 }
0x165a   :  { %v743_v7 = vpop.permute.xlu0 %742 }
0x165b   :  { %v745_v2 = vmul.f32 %v743_v7, %v726_v61 }
0x165d   :  { %747 = vrot.lane.b32.xlu1 %v745_v2, %s1871_s27 }
0x1662   :  { %v752_v17 = vpop.permute.xlu0 %751 }
0x16cf   :  { %v748_v8 = vpop.permute.xlu1 %747 }
0x16d0   :  { %v754_v9 = vsel %vm112_vm2, %v748_v8, %v752_v17 }
0x16d1   :  { %v755_v10 = vpack.c.bf16 %v754_v9, %v754_v9 }
0x16d3   :  { %1652 = vmatmul.msk.bf16.vlgmr.msra.gmra.mxu2 %vm139_vm3, %v755_v10 }
0x16d4   :  { %1225 = vmatpush.bf16.msra.mxu2 %v1945_v3 }
0x16d8   :  { %1226 = vmatpush.bf16.msra.mxu2 %v1951_v4 }
0x16dc   :  { %1227 = vmatpush.bf16.msra.mxu2 %v1958_v5 }
0x16e0   :  { %1228 = vmatpush.bf16.msra.mxu2 %v1970_v11 }
0x1756   :  { %v768_v59 = vpop.f32.mrf.mxu2 }
0x1757   :  { %v769_v12 = vadd.f32 %v2044_v52, %v768_v59 }
0x1759   :  { %1760 = vtanh.f32 %v769_v12  ;;  %v1653_v23 = vmul.f32 -1.442695, %v769_v12 }
0x175b   :  { %1762 = vpow2.f32 %v1653_v23 }
0x175e   :  { %v770_v15 = vpop.f32.mrf.mxu2 }
0x175f   :  { %v1761_v16 = vpop.eup %1760 }
0x1760   :  { %794 = vrot.lane.b32.xlu2 %v1761_v16, %s1873_s12 }
0x1761   :  { %v1763_v24 = vpop.eup %1762 }
0x1762   :  { %v775_v26 = vadd.f32 1.0, %v1763_v24 }
0x1764   :  { %1764 = vrcp.f32 %v775_v26  ;;  %v787_v11 = vand.u32 2147483648, %v775_v26  ;;  %vm781_vm11 = vweird.f32 %v775_v26  ;;  %v785_v18 = vand.u32 2147483647, %v775_v26 }
0x1766   :  { %v788_v31 = vor.u32 1.1754944e-38, %v787_v11  ;;  %vm786_vm13 = vcmp.eq.f32.partialorder %v785_v18, 8.507059e+37 }
0x176a   :  { %v1765_v3 = vpop.eup %1764 }
0x176b   :  { %v777_v27 = vmul.f32 %v1765_v3, %v775_v26  ;;  %vm782_vm10 = vweird.f32 %v1765_v3 }
0x176c   :  { %vm783_vm12 = vmor %vm781_vm11, %vm782_vm10 }
0x176d   :  { %v778_v4 = vsub.f32 1.0, %v777_v27 }
0x176f   :  { %v779_v28 = vmul.f32 %v1765_v3, %v778_v4 }
0x1771   :  { %v780_v5 = vadd.f32 %v1765_v3, %v779_v28 }
0x1773   :  { %v784_v52 = vsel %vm783_vm12, %v1765_v3, %v780_v5 }
0x1774   :  { %v789_v34 = vsel %vm786_vm13, %v788_v31, %v784_v52 }
0x1775   :  { %v792_v30 = vmul.f32 %v789_v34, %v2184_v56 }
0x17ba   :  { %v795_v33 = vpop.permute.xlu2 %794 }
0x17bb   :  { %v797_v41 = vmul.f32 %v795_v33, %v789_v34 }
0x17bd   :  { %799 = vrot.lane.b32.xlu1 %v797_v41, %s1871_s27 }
0x182f   :  { %v800_v35 = vpop.permute.xlu1 %799 }
0x1830   :  { %v2241_v36 = vadd.f32 %v800_v35, %v792_v30 }
0x1832   :  { %1766 = vtanh.f32 %v2241_v36 }
0x1838   :  { %v1767_v37 = vpop.eup %1766 }
0x1839   :  { %805 = vrot.lane.b32.xlu0 %v1767_v37, %s1873_s12 }
0x18ab   :  { %v806_v38 = vpop.permute.xlu0 %805 }
0x18ac   :  { %v2245_v39 = vmul.f32 %v806_v38, %v789_v34 }
0x18ae   :  { %v809_v40 = vpack.c.bf16 %v2245_v39, %v2245_v39 }
0x18b0   :  { %811 = vrot.lane.b32.xlu2 %v809_v40, %s1871_s27 }
0x190a   :  { %v812_v42 = vpop.permute.xlu2 %811 }
0x190b   :  { %1654 = vmatmul.msk.bf16.vlgmr.msrb.gmra.mxu0 %vm112_vm2, %v812_v42 }
0x190c   :  { %1288 = vmatpush.bf16.msrb.mxu0 %v2001_v43 }
0x1910   :  { %1289 = vmatpush.bf16.msrb.mxu0 %v2007_v44 }
0x1914   :  { %1290 = vmatpush.bf16.msrb.mxu0 %v2014_v45 }
0x1918   :  { %1291 = vmatpush.bf16.msrb.mxu0 %v2026_v48 }
0x1988   :  { %v825_v56 = vpop.f32.mrf.mxu0 }
0x1989   :  { %v826_v46 = vadd.f32 %v2087_v25, %v825_v56  ;;  %v1834_v56 = vld [vmem:[%s2506_s4 + $0x10] sm:$0xff] }
0x198b   :  { %v831_v49 = vadd.f32 %v1655_v54, %v826_v46  ;;  %v1835_v54 = vld [vmem:[%s2506_s4 + $0x8] sm:$0xff]  ;;  %v1836_v46 = vld [vmem:[%s2506_s4] sm:$0xff] }
0x198d   :  { %832 = vmax.xlane.f32.xlu1 %v831_v49 }
0x1990   :  { %v827_v51 = vpop.f32.mrf.mxu0 }
0x1991   :  { %v2313_v51 = vld [vmem:[%s2509_s7] ss:$0 sm:$0xff] }
0x19a6   :  { %863 = vrot.lane.b32.xlu1 %v745_v2, %s1873_s12 }
0x1a00   :  { %v833_v47 = vpop.xlane.xlu1 %832 }
0x1a01   :  { %vm834_vm14 = vcmp.ge.f32.partialorder %v831_v49, %v833_v47 }
0x1a02   :  { %v835_v43 = vsel %vm834_vm14, %v1974_v13, 128 }
0x1a03   :  { %v837_v44 = vshra.s32 %v835_v43, 16  ;;  %v836_v48 = vand.u32 65535, %v835_v43 }
0x1a05   :  { %v839_v45 = vcvt.s32.f32 %v837_v44  ;;  %v838_v57 = vcvt.s32.f32 %v836_v48 }
0x1a07   :  { %840 = vmin.xlane.f32.xlu0 %v839_v45 }
0x1a18   :  { %v864_v2 = vpop.permute.xlu1 %863 }
0x1a7a   :  { %v841_v55 = vpop.xlane.xlu0 %840 }
0x1a7b   :  { %vm842_vm15 = vcmp.eq.f32.partialorder %v839_v45, %v841_v55  ;;  %v847_v58 = vcvt.f32.s32 %v841_v55 }
0x1a7c   :  { %v843_v19 = vsel %vm842_vm15, %v838_v57, inf }
0x1a7d   :  { %844 = vmin.xlane.f32.xlu2 %v843_v19  ;;  %v848_v60 = vshll.u32 %v847_v58, 16 }
0x1af0   :  { %v845_v25 = vpop.xlane.xlu2 %844 }
0x1af1   :  { %v846_v61 = vcvt.f32.s32 %v845_v25 }
0x1af3   :  { %v849_v63 = vadd.s32 %v848_v60, %v846_v61 }
0x1af5   :  { %vm850_vm0 = vcmp.eq.s32.totalorder %v849_v63, 2 }
0x1af6   :  { %v851_v62 = vsel %vm850_vm0, 1, %v1874_v50 }
0x1af7   :  { %vm852_vm4 = vcmp.gt.s32.totalorder %v2208_v29, %v851_v62 }
0x1af8   :  { %v2265_v0 = vsel %vm852_vm4, %v2208_v29, %v851_v62 }
0x1af9   :  { %vm854_vm1 = vcmp.gt.s32.totalorder %v2265_v0, 0 }
0x1afa   :  { %v855_v6 = vsel %vm854_vm1, 0, %v849_v63  ;;  %vm1033_vm1 = vcmp.eq.s32.totalorder %v1974_v13, 4 }
0x1afb   :  { %v2269_v7 = vsel %vm858_vm5, %v855_v6, %v2212_v32  ;;  %vm860_vm6 = vcmp.eq.s32.totalorder %v1974_v13, %v855_v6  ;;  %v2280_v32 = vld [vmem:[%s2507_s5] ss:$0 sm:$0xff] }
0x1afc   :  { %v1656_v17 = vsel %vm860_vm6, 1.0, %v1872_v14 }
0x1afd   :  { %v866_v8 = vsel %vm112_vm2, %v1656_v17, %v864_v2 }
0x1afe   :  { %v867_v9 = vpack.c.bf16 %v866_v8, %v866_v8 }
0x1b00   :  { %1657 = vmatmul.msk.bf16.vlgmr.msrb.gmra.mxu3 %vm139_vm3, %v867_v9 }
0x1b01   :  { %1347 = vmatpush.bf16.msrb.mxu3 %v2057_v20 }
0x1b05   :  { %1348 = vmatpush.bf16.msrb.mxu3 %v2063_v21 }
0x1b83   :  { %v880_v10 = vpop.f32.mrf.mxu3 }
0x1b84   :  { %v881_v59 = vadd.f32 %v2280_v32, %v880_v10 }
0x1b86   :  { %1768 = vtanh.f32 %v881_v59  ;;  %v1658_v16 = vmul.f32 -1.442695, %v881_v59 }
0x1b88   :  { %1770 = vpow2.f32 %v1658_v16 }
0x1b8b   :  { %v882_v12 = vpop.f32.mrf.mxu3 }
0x1b8c   :  { %v1769_v15 = vpop.eup %1768 }
0x1b8d   :  { %906 = vrot.lane.b32.xlu0 %v1769_v15, %s1873_s12 }
0x1b8e   :  { %v1771_v23 = vpop.eup %1770 }
0x1b8f   :  { %v887_v24 = vadd.f32 1.0, %v1771_v23 }
0x1b91   :  { %1772 = vrcp.f32 %v887_v24  ;;  %v899_v4 = vand.u32 2147483648, %v887_v24  ;;  %vm893_vm8 = vweird.f32 %v887_v24  ;;  %v897_v28 = vand.u32 2147483647, %v887_v24 }
0x1b93   :  { %v900_v11 = vor.u32 1.1754944e-38, %v899_v4  ;;  %vm898_vm10 = vcmp.eq.f32.partialorder %v897_v28, 8.507059e+37  ;;  %v2343_v4 = vld [vmem:[%s2511_s9] ss:$0 sm:$0xff] }
0x1b97   :  { %v1773_v20 = vpop.eup %1772 }
0x1b98   :  { %v889_v21 = vmul.f32 %v1773_v20, %v887_v24  ;;  %vm894_vm7 = vweird.f32 %v1773_v20 }
0x1b99   :  { %vm895_vm9 = vmor %vm893_vm8, %vm894_vm7 }
0x1b9a   :  { %v890_v26 = vsub.f32 1.0, %v889_v21  ;;  %v1840_v21 = vld [vmem:[%s2508_s6 + $0x8] sm:$0xff] }
0x1b9c   :  { %v891_v3 = vmul.f32 %v1773_v20, %v890_v26  ;;  %v1841_v26 = vld [vmem:[%s2508_s6] sm:$0xff] }
0x1b9e   :  { %v892_v27 = vadd.f32 %v1773_v20, %v891_v3 }
0x1ba0   :  { %v896_v5 = vsel %vm895_vm9, %v1773_v20, %v892_v27  ;;  %v1839_v20 = vld [vmem:[%s2508_s6 + $0x10] sm:$0xff]  ;;  %v1662_v27 = vld [vmem:[%s2503_s1 + $0x20] sm:$0xff] }
0x1ba1   :  { %v901_v52 = vsel %vm898_vm10, %v900_v11, %v896_v5 }
0x1ba2   :  { %v904_v33 = vmul.f32 %v901_v52, %v2224_v1  ;;  %v1833_v1 = vld [vmem:[%s2506_s4 + $0x18] sm:$0xff] }
0x1bff   :  { %v907_v18 = vpop.permute.xlu0 %906 }
0x1c00   :  { %v909_v31 = vmul.f32 %v907_v18, %v901_v52 }
0x1c02   :  { %911 = vrot.lane.b32.xlu2 %v909_v31, %s1871_s27 }
0x1c0a   :  { %926 = vrot.lane.b32.xlu2 %v2245_v39, %s1873_s12 }
0x1c5c   :  { %v912_v34 = vpop.permute.xlu2 %911 }
0x1c5d   :  { %v2288_v41 = vadd.f32 %v912_v34, %v904_v33 }
0x1c5f   :  { %1774 = vtanh.f32 %v2288_v41 }
0x1c64   :  { %v927_v38 = vpop.permute.xlu2 %926 }
0x1c65   :  { %v1775_v30 = vpop.eup %1774 }
0x1c66   :  { %917 = vrot.lane.b32.xlu0 %v1775_v30, %s1873_s12 }
0x1cd8   :  { %v918_v35 = vpop.permute.xlu0 %917 }
0x1cd9   :  { %v2292_v37 = vmul.f32 %v918_v35, %v901_v52 }
0x1cdb   :  { %922 = vrot.lane.b32.xlu1 %v2292_v37, %s1871_s27 }
0x1d4d   :  { %v923_v40 = vpop.permute.xlu1 %922 }
0x1d4e   :  { %v929_v39 = vsel %vm112_vm2, %v923_v40, %v927_v38 }
0x1d4f   :  { %v930_v42 = vpack.c.bf16 %v929_v39, %v929_v39 }
0x1d51   :  { %1659 = vmatmul.msk.bf16.vlgmr.msrb.gmra.mxu1 %vm139_vm3, %v930_v42 }
0x1d52   :  { %1400 = vmatpush.bf16.msrb.mxu1 %v1833_v1 }
0x1d56   :  { %1401 = vmatpush.bf16.msrb.mxu1 %v1834_v56 }
0x1d5a   :  { %1402 = vmatpush.bf16.msrb.mxu1 %v1835_v54 }
0x1d5e   :  { %1403 = vmatpush.bf16.msrb.mxu1 %v1836_v46 }
0x1dce   :  { %v943_v49 = vpop.f32.mrf.mxu1 }
0x1dcf   :  { %v944_v47 = vadd.f32 %v2313_v51, %v943_v49 }
0x1dd1   :  { %1776 = vtanh.f32 %v944_v47  ;;  %v1660_v45 = vmul.f32 -1.442695, %v944_v47 }
0x1dd3   :  { %1778 = vpow2.f32 %v1660_v45 }
0x1dd6   :  { %v945_v43 = vpop.f32.mrf.mxu1 }
0x1dd7   :  { %v1777_v44 = vpop.eup %1776 }
0x1dd8   :  { %969 = vrot.lane.b32.xlu0 %v1777_v44, %s1873_s12 }
0x1dd9   :  { %v1779_v48 = vpop.eup %1778 }
0x1dda   :  { %v950_v55 = vadd.f32 1.0, %v1779_v48  ;;  %v1843_v48 = vld [vmem:[%s2510_s8 + $0x8] sm:$0xff] }
0x1ddc   :  { %1780 = vrcp.f32 %v950_v55  ;;  %v962_v61 = vand.u32 2147483648, %v950_v55  ;;  %vm956_vm12 = vweird.f32 %v950_v55  ;;  %v960_v63 = vand.u32 2147483647, %v950_v55 }
0x1dde   :  { %v963_v6 = vor.u32 1.1754944e-38, %v962_v61  ;;  %vm961_vm14 = vcmp.eq.f32.partialorder %v960_v63, 8.507059e+37 }
0x1de2   :  { %v1781_v57 = vpop.eup %1780 }
0x1de3   :  { %v952_v19 = vmul.f32 %v1781_v57, %v950_v55  ;;  %vm957_vm11 = vweird.f32 %v1781_v57 }
0x1de4   :  { %vm958_vm13 = vmor %vm956_vm12, %vm957_vm11 }
0x1de5   :  { %v953_v58 = vsub.f32 1.0, %v952_v19 }
0x1de7   :  { %v954_v25 = vmul.f32 %v1781_v57, %v953_v58 }
0x1de9   :  { %v955_v60 = vadd.f32 %v1781_v57, %v954_v25 }
0x1deb   :  { %v959_v62 = vsel %vm958_vm13, %v1781_v57, %v955_v60 }
0x1dec   :  { %v964_v17 = vsel %vm961_vm14, %v963_v6, %v959_v62 }
0x1ded   :  { %v967_v9 = vmul.f32 %v964_v17, %v2241_v36  ;;  %v1838_v36 = vld [vmem:[%s2508_s6 + $0x18] sm:$0xff] }
0x1e4a   :  { %v970_v2 = vpop.permute.xlu0 %969 }
0x1e4b   :  { %v972_v8 = vmul.f32 %v970_v2, %v964_v17 }
0x1e4d   :  { %974 = vrot.lane.b32.xlu1 %v972_v8, %s1871_s27 }
0x1ebf   :  { %v975_v10 = vpop.permute.xlu1 %974 }
0x1ec0   :  { %v2319_v59 = vadd.f32 %v975_v10, %v967_v9 }
0x1ec2   :  { %1782 = vtanh.f32 %v2319_v59 }
0x1ec8   :  { %v1783_v12 = vpop.eup %1782 }
0x1ec9   :  { %980 = vrot.lane.b32.xlu2 %v1783_v12, %s1873_s12 }
0x1f23   :  { %v981_v15 = vpop.permute.xlu2 %980 }
0x1f24   :  { %v983_v16 = vmul.f32 %v981_v15, %v964_v17 }
0x1f26   :  { %v984_v23 = vpack.c.bf16 %v983_v16, %v983_v16 }
0x1f28   :  { %986 = vrot.lane.b32.xlu0 %v984_v23, %s1871_s27 }
0x1f9a   :  { %v987_v24 = vpop.permute.xlu0 %986 }
0x1f9b   :  { %1661 = vmatmul.msk.bf16.vlgmr.msrb.gmra.mxu2 %vm112_vm2, %v987_v24 }
0x1f9c   :  { %1463 = vmatpush.bf16.msrb.mxu2 %v1838_v36 }
0x1fa0   :  { %1464 = vmatpush.bf16.msrb.mxu2 %v1839_v20 }
0x1fa4   :  { %1465 = vmatpush.bf16.msrb.mxu2 %v1840_v21 }
0x1fa8   :  { %1466 = vmatpush.bf16.msrb.mxu2 %v1841_v26 }
0x201e   :  { %v1000_v3 = vpop.f32.mrf.mxu2 }
0x201f   :  { %v1001_v28 = vadd.f32 %v2343_v4, %v1000_v3 }
0x2021   :  { %v1006_v5 = vadd.f32 %v1662_v27, %v1001_v28 }
0x2023   :  { %1007 = vmax.xlane.f32.xlu1 %v1006_v5 }
0x2026   :  { %v1002_v11 = vpop.f32.mrf.mxu2 }
0x2096   :  { %v1008_v18 = vpop.xlane.xlu1 %1007 }
0x2097   :  { %vm1009_vm15 = vcmp.ge.f32.partialorder %v1006_v5, %v1008_v18 }
0x2098   :  { %v1010_v52 = vsel %vm1009_vm15, %v1974_v13, 128 }
0x2099   :  { %v1012_v31 = vshra.s32 %v1010_v52, 16  ;;  %v1011_v34 = vand.u32 65535, %v1010_v52 }
0x209b   :  { %v1014_v33 = vcvt.s32.f32 %v1012_v31  ;;  %v1013_v35 = vcvt.s32.f32 %v1011_v34 }
0x209d   :  { %1015 = vmin.xlane.f32.xlu2 %v1014_v33 }
0x20b5   :  { %1038 = vrot.lane.b32.xlu2 %v2292_v37, %s1873_s12 }
0x2110   :  { %v1016_v30 = vpop.xlane.xlu2 %1015 }
0x2111   :  { %vm1017_vm0 = vcmp.eq.f32.partialorder %v1014_v33, %v1016_v30  ;;  %v1022_v40 = vcvt.f32.s32 %v1016_v30 }
0x2112   :  { %v1018_v38 = vsel %vm1017_vm0, %v1013_v35, inf }
0x2113   :  { %1019 = vmin.xlane.f32.xlu0 %v1018_v38  ;;  %v1023_v42 = vshll.u32 %v1022_v40, 16 }
0x2118   :  { %v1039_v47 = vpop.permute.xlu2 %1038 }
0x2186   :  { %v1020_v39 = vpop.xlane.xlu0 %1019 }
0x2187   :  { %v1021_v1 = vcvt.f32.s32 %v1020_v39 }
0x2189   :  { %v1024_v56 = vadd.s32 %v1023_v42, %v1021_v1 }
0x218b   :  { %vm1025_vm4 = vcmp.eq.s32.totalorder %v1024_v56, 2 }
0x218c   :  { %v1026_v54 = vsel %vm1025_vm4, 1, %v1874_v50 }
0x218d   :  { %vm1027_vm5 = vcmp.gt.s32.totalorder %v2265_v0, %v1026_v54 }
0x218e   :  { %v2353_v37 = vsel %vm1027_vm5, %v2265_v0, %v1026_v54 }
0x218f   :  { %vm1029_vm6 = vcmp.gt.s32.totalorder %v2353_v37, 0 }
0x2190   :  { %v1030_v46 = vsel %vm1029_vm6, 0, %v1024_v56  ;;  %vm1208_vm6 = vcmp.eq.s32.totalorder %v1974_v13, 5 }
0x2191   :  { %v2357_v49 = vsel %vm1033_vm1, %v1030_v46, %v2269_v7  ;;  %vm1035_vm7 = vcmp.eq.s32.totalorder %v1974_v13, %v1030_v46  ;;  %v1844_v7 = vld [vmem:[%s2510_s8] sm:$0xff] }
0x2192   :  { %v1663_v43 = vsel %vm1035_vm7, 1.0, %v1872_v14 }
0x2193   :  { %v1041_v44 = vsel %vm112_vm2, %v1663_v43, %v1039_v47 }
0x2194   :  { %v1042_v45 = vpack.c.bf16 %v1041_v44, %v1041_v44 }
0x2196   :  { %1664 = vmatmul.msk.bf16.vlgmr.msra.gmra.mxu0 %vm139_vm3, %v1042_v45 }
0x2197   :  { %1522 = vmatpush.bf16.msra.mxu0 %v1843_v48 }
0x219b   :  { %1523 = vmatpush.bf16.msra.mxu0 %v1844_v7 }
0x2213   :  { %v1055_v55 = vpop.f32.mrf.mxu0 }
0x2214   :  { %v1056_v57 = vadd.f32 %v2280_v32, %v1055_v55 }
0x2216   :  { %1784 = vtanh.f32 %v1056_v57  ;;  %v1665_v25 = vmul.f32 -1.442695, %v1056_v57 }
0x2218   :  { %1786 = vpow2.f32 %v1665_v25 }
0x221b   :  { %v1057_v19 = vpop.f32.mrf.mxu0 }
0x221c   :  { %v1785_v58 = vpop.eup %1784 }
0x221d   :  { %1081 = vrot.lane.b32.xlu1 %v1785_v58, %s1873_s12 }
0x221e   :  { %v1787_v60 = vpop.eup %1786 }
0x221f   :  { %v1062_v61 = vadd.f32 1.0, %v1787_v60  ;;  %v1669_v60 = vld [vmem:[%s2503_s1 + $0x28] sm:$0xff] }
0x2221   :  { %1788 = vrcp.f32 %v1062_v61  ;;  %v1074_v8 = vand.u32 2147483648, %v1062_v61  ;;  %vm1068_vm9 = vweird.f32 %v1062_v61  ;;  %v1072_v9 = vand.u32 2147483647, %v1062_v61 }
0x2223   :  { %v1075_v12 = vor.u32 1.1754944e-38, %v1074_v8  ;;  %vm1073_vm11 = vcmp.eq.f32.partialorder %v1072_v9, 8.507059e+37 }
0x2225   :  { %1101 = vrot.lane.b32.xlu1 %v983_v16, %s1873_s12 }
0x2227   :  { %v1789_v63 = vpop.eup %1788 }
0x2228   :  { %v1064_v62 = vmul.f32 %v1789_v63, %v1062_v61  ;;  %vm1069_vm8 = vweird.f32 %v1789_v63 }
0x2229   :  { %vm1070_vm10 = vmor %vm1068_vm9, %vm1069_vm8 }
0x222a   :  { %v1065_v6 = vsub.f32 1.0, %v1064_v62 }
0x222c   :  { %v1066_v2 = vmul.f32 %v1789_v63, %v1065_v6 }
0x222e   :  { %v1067_v17 = vadd.f32 %v1789_v63, %v1066_v2 }
0x2230   :  { %v1071_v10 = vsel %vm1070_vm10, %v1789_v63, %v1067_v17 }
0x2231   :  { %v1076_v16 = vsel %vm1073_vm11, %v1075_v12, %v1071_v10 }
0x2232   :  { %v1079_v24 = vmul.f32 %v1076_v16, %v2288_v41 }
0x228f   :  { %v1082_v15 = vpop.permute.xlu1 %1081 }
0x2290   :  { %v1084_v23 = vmul.f32 %v1082_v15, %v1076_v16 }
0x2292   :  { %1086 = vrot.lane.b32.xlu0 %v1084_v23, %s1871_s27 }
0x2297   :  { %v1102_v27 = vpop.permute.xlu1 %1101 }
0x2304   :  { %v1087_v36 = vpop.permute.xlu0 %1086 }
0x2305   :  { %v2374_v20 = vadd.f32 %v1087_v36, %v1079_v24 }
0x2307   :  { %1790 = vtanh.f32 %v2374_v20 }
0x230d   :  { %v1791_v21 = vpop.eup %1790 }
0x230e   :  { %1092 = vrot.lane.b32.xlu2 %v1791_v21, %s1873_s12 }
0x2368   :  { %v1093_v26 = vpop.permute.xlu2 %1092 }
0x2369   :  { %v1095_v3 = vmul.f32 %v1093_v26, %v1076_v16 }
0x236b   :  { %1097 = vrot.lane.b32.xlu0 %v1095_v3, %s1871_s27 }
0x23dd   :  { %v1098_v28 = vpop.permute.xlu0 %1097 }
0x23de   :  { %v1104_v5 = vsel %vm112_vm2, %v1098_v28, %v1102_v27 }
0x23df   :  { %v1105_v11 = vpack.c.bf16 %v1104_v5, %v1104_v5 }
0x23e1   :  { %1666 = vmatmul.msk.bf16.vlgmr.msra.gmra.mxu3 %vm139_vm3, %v1105_v11 }
0x2464   :  { %v1118_v41 = vpop.f32.mrf.mxu3 }
0x2465   :  { %v1119_v18 = vadd.f32 %v2313_v51, %v1118_v41 }
0x2467   :  { %1792 = vtanh.f32 %v1119_v18  ;;  %v1667_v33 = vmul.f32 -1.442695, %v1119_v18 }
0x2469   :  { %1794 = vpow2.f32 %v1667_v33 }
0x246c   :  { %v1120_v52 = vpop.f32.mrf.mxu3 }
0x246d   :  { %v1793_v31 = vpop.eup %1792 }
0x246e   :  { %1144 = vrot.lane.b32.xlu2 %v1793_v31, %s1873_s12 }
0x246f   :  { %v1795_v34 = vpop.eup %1794 }
0x2470   :  { %v1125_v30 = vadd.f32 1.0, %v1795_v34 }
0x2472   :  { %1796 = vrcp.f32 %v1125_v30  ;;  %v1137_v1 = vand.u32 2147483648, %v1125_v30  ;;  %vm1131_vm13 = vweird.f32 %v1125_v30  ;;  %v1135_v56 = vand.u32 2147483647, %v1125_v30 }
0x2474   :  { %v1138_v46 = vor.u32 1.1754944e-38, %v1137_v1  ;;  %vm1136_vm15 = vcmp.eq.f32.partialorder %v1135_v56, 8.507059e+37 }
0x2478   :  { %v1797_v35 = vpop.eup %1796 }
0x2479   :  { %v1127_v38 = vmul.f32 %v1797_v35, %v1125_v30  ;;  %vm1132_vm12 = vweird.f32 %v1797_v35 }
0x247a   :  { %vm1133_vm14 = vmor %vm1131_vm13, %vm1132_vm12 }
0x247b   :  { %v1128_v40 = vsub.f32 1.0, %v1127_v38 }
0x247d   :  { %v1129_v39 = vmul.f32 %v1797_v35, %v1128_v40 }
0x247f   :  { %v1130_v42 = vadd.f32 %v1797_v35, %v1129_v39 }
0x2481   :  { %v1134_v54 = vsel %vm1133_vm14, %v1797_v35, %v1130_v42 }
0x2482   :  { %v1139_v43 = vsel %vm1136_vm15, %v1138_v46, %v1134_v54 }
0x2483   :  { %v1142_v45 = vmul.f32 %v1139_v43, %v2319_v59 }
0x24c8   :  { %v1145_v47 = vpop.permute.xlu2 %1144 }
0x24c9   :  { %v1147_v44 = vmul.f32 %v1145_v47, %v1139_v43 }
0x24cb   :  { %1149 = vrot.lane.b32.xlu0 %v1147_v44, %s1871_s27 }
0x253d   :  { %v1150_v48 = vpop.permute.xlu0 %1149 }
0x253e   :  { %v2385_v7 = vadd.f32 %v1150_v48, %v1142_v45 }
0x2540   :  { %1798 = vtanh.f32 %v2385_v7 }
0x2546   :  { %v1799_v55 = vpop.eup %1798 }
0x2547   :  { %1155 = vrot.lane.b32.xlu1 %v1799_v55, %s1873_s12 }
0x25b9   :  { %v1156_v57 = vpop.permute.xlu1 %1155 }
0x25ba   :  { %v2389_v19 = vmul.f32 %v1156_v57, %v1139_v43 }
0x25bc   :  { %v1159_v58 = vpack.c.bf16 %v2389_v19, %v2389_v19 }
0x25be   :  { %1161 = vrot.lane.b32.xlu2 %v1159_v58, %s1871_s27 }
0x2618   :  { %v1162_v25 = vpop.permute.xlu2 %1161 }
0x2619   :  { %1668 = vmatmul.msk.bf16.vlgmr.msra.gmra.mxu1 %vm112_vm2, %v1162_v25 }
0x2696   :  { %v1175_v59 = vpop.f32.mrf.mxu1 }
0x2697   :  { %v1176_v61 = vadd.f32 %v2343_v4, %v1175_v59 }
0x2699   :  { %v1181_v63 = vadd.f32 %v1669_v60, %v1176_v61 }
0x269b   :  { %1182 = vmax.xlane.f32.xlu0 %v1181_v63 }
0x269e   :  { %v1177_v62 = vpop.f32.mrf.mxu1 }
0x26af   :  { %1213 = vrot.lane.b32.xlu0 %v1095_v3, %s1873_s12 }
0x270e   :  { %v1183_v6 = vpop.xlane.xlu0 %1182 }
0x270f   :  { %vm1184_vm0 = vcmp.ge.f32.partialorder %v1181_v63, %v1183_v6 }
0x2710   :  { %v1185_v2 = vsel %vm1184_vm0, %v1974_v13, 128 }
0x2711   :  { %v1187_v17 = vshra.s32 %v1185_v2, 16  ;;  %v1186_v9 = vand.u32 65535, %v1185_v2 }
0x2713   :  { %v1189_v8 = vcvt.s32.f32 %v1187_v17  ;;  %v1188_v12 = vcvt.s32.f32 %v1186_v9 }
0x2715   :  { %1190 = vmin.xlane.f32.xlu1 %v1189_v8 }
0x2721   :  { %v1214_v5 = vpop.permute.xlu0 %1213 }
0x2788   :  { %v1191_v10 = vpop.xlane.xlu1 %1190 }
0x2789   :  { %vm1192_vm4 = vcmp.eq.f32.partialorder %v1189_v8, %v1191_v10  ;;  %v1197_v16 = vcvt.f32.s32 %v1191_v10 }
0x278a   :  { %v1193_v15 = vsel %vm1192_vm4, %v1188_v12, inf }
0x278b   :  { %1194 = vmin.xlane.f32.xlu2 %v1193_v15  ;;  %v1198_v24 = vshll.u32 %v1197_v16, 16 }
0x27fe   :  { %v1195_v23 = vpop.xlane.xlu2 %1194 }
0x27ff   :  { %v1196_v36 = vcvt.f32.s32 %v1195_v23 }
0x2801   :  { %v1199_v21 = vadd.s32 %v1198_v24, %v1196_v36 }
0x2803   :  { %vm1200_vm5 = vcmp.eq.s32.totalorder %v1199_v21, 2 }
0x2804   :  { %v1201_v26 = vsel %vm1200_vm5, 1, %v1874_v50 }
0x2805   :  { %vm1202_vm1 = vcmp.gt.s32.totalorder %v2353_v37, %v1201_v26 }
0x2806   :  { %v2405_v3 = vsel %vm1202_vm1, %v2353_v37, %v1201_v26 }
0x2807   :  { %vm1204_vm7 = vcmp.gt.s32.totalorder %v2405_v3, 0 }
0x2808   :  { %v1205_v27 = vsel %vm1204_vm7, 0, %v1199_v21  ;;  %vm1383_vm7 = vcmp.eq.s32.totalorder %v1974_v13, 6 }
0x2809   :  { %v2409_v28 = vsel %vm1208_vm6, %v1205_v27, %v2357_v49  ;;  %vm1210_vm8 = vcmp.eq.s32.totalorder %v1974_v13, %v1205_v27 }
0x280a   :  { %v1670_v11 = vsel %vm1210_vm8, 1.0, %v1872_v14 }
0x280b   :  { %v1216_v41 = vsel %vm112_vm2, %v1670_v11, %v1214_v5 }
0x280c   :  { %v1217_v18 = vpack.c.bf16 %v1216_v41, %v1216_v41 }
0x280e   :  { %1671 = vmatmul.msk.bf16.vlgmr.msra.gmra.mxu2 %vm139_vm3, %v1217_v18 }
0x2891   :  { %v1230_v52 = vpop.f32.mrf.mxu2 }
0x2892   :  { %v1231_v31 = vadd.f32 %v2280_v32, %v1230_v52 }
0x2894   :  { %1800 = vtanh.f32 %v1231_v31  ;;  %v1672_v49 = vmul.f32 -1.442695, %v1231_v31 }
0x2896   :  { %1802 = vpow2.f32 %v1672_v49 }
0x2899   :  { %v1232_v33 = vpop.f32.mrf.mxu2 }
0x289a   :  { %v1801_v34 = vpop.eup %1800 }
0x289b   :  { %1256 = vrot.lane.b32.xlu1 %v1801_v34, %s1873_s12 }
0x289c   :  { %v1803_v30 = vpop.eup %1802 }
0x289d   :  { %v1237_v35 = vadd.f32 1.0, %v1803_v30 }
0x289f   :  { %1804 = vrcp.f32 %v1237_v35  ;;  %v1249_v56 = vand.u32 2147483648, %v1237_v35  ;;  %vm1243_vm10 = vweird.f32 %v1237_v35  ;;  %v1247_v54 = vand.u32 2147483647, %v1237_v35 }
0x28a1   :  { %v1250_v47 = vor.u32 1.1754944e-38, %v1249_v56  ;;  %vm1248_vm12 = vcmp.eq.f32.partialorder %v1247_v54, 8.507059e+37 }
0x28a5   :  { %v1805_v38 = vpop.eup %1804 }
0x28a6   :  { %v1239_v40 = vmul.f32 %v1805_v38, %v1237_v35  ;;  %vm1244_vm9 = vweird.f32 %v1805_v38  ;;  %v1676_v35 = vld [vmem:[%s2503_s1 + $0x30] sm:$0xff] }
0x28a7   :  { %vm1245_vm11 = vmor %vm1243_vm10, %vm1244_vm9 }
0x28a8   :  { %v1240_v39 = vsub.f32 1.0, %v1239_v40 }
0x28aa   :  { %v1241_v42 = vmul.f32 %v1805_v38, %v1240_v39 }
0x28ac   :  { %v1242_v1 = vadd.f32 %v1805_v38, %v1241_v42 }
0x28ae   :  { %v1246_v46 = vsel %vm1245_vm11, %v1805_v38, %v1242_v1 }
0x28af   :  { %v1251_v44 = vsel %vm1248_vm12, %v1250_v47, %v1246_v46 }
0x28b0   :  { %v1254_v48 = vmul.f32 %v1251_v44, %v2374_v20 }
0x290d   :  { %v1257_v43 = vpop.permute.xlu1 %1256 }
0x290e   :  { %v1259_v45 = vmul.f32 %v1257_v43, %v1251_v44 }
0x2910   :  { %1261 = vrot.lane.b32.xlu2 %v1259_v45, %s1871_s27 }
0x296a   :  { %v1262_v55 = vpop.permute.xlu2 %1261 }
0x296b   :  { %v2419_v57 = vadd.f32 %v1262_v55, %v1254_v48 }
0x296d   :  { %1806 = vtanh.f32 %v2419_v57 }
0x2973   :  { %v1807_v58 = vpop.eup %1806 }
0x2974   :  { %1267 = vrot.lane.b32.xlu0 %v1807_v58, %s1873_s12 }
0x297c   :  { %1276 = vrot.lane.b32.xlu0 %v2389_v19, %s1873_s12 }
0x29e6   :  { %v1268_v25 = vpop.permute.xlu0 %1267 }
0x29e7   :  { %v1270_v59 = vmul.f32 %v1268_v25, %v1251_v44 }
0x29e9   :  { %1272 = vrot.lane.b32.xlu1 %v1270_v59, %s1871_s27 }
0x29ee   :  { %v1277_v60 = vpop.permute.xlu0 %1276 }
0x2a5b   :  { %v1273_v61 = vpop.permute.xlu1 %1272 }
0x2a5c   :  { %v1279_v63 = vsel %vm112_vm2, %v1273_v61, %v1277_v60 }
0x2a5d   :  { %v1280_v20 = vpack.c.bf16 %v1279_v63, %v1279_v63 }
0x2a5f   :  { %1673 = vmatmul.msk.bf16.vlgmr.msrb.gmra.mxu0 %vm139_vm3, %v1280_v20 }
0x2adc   :  { %v1293_v62 = vpop.f32.mrf.mxu0 }
0x2add   :  { %v1294_v6 = vadd.f32 %v2313_v51, %v1293_v62 }
0x2adf   :  { %1808 = vtanh.f32 %v1294_v6  ;;  %v1674_v19 = vmul.f32 -1.442695, %v1294_v6 }
0x2ae1   :  { %1810 = vpow2.f32 %v1674_v19 }
0x2ae4   :  { %v1295_v2 = vpop.f32.mrf.mxu0 }
0x2ae5   :  { %v1809_v17 = vpop.eup %1808 }
0x2ae6   :  { %1319 = vrot.lane.b32.xlu2 %v1809_v17, %s1873_s12 }
0x2ae7   :  { %v1811_v8 = vpop.eup %1810 }
0x2ae8   :  { %v1300_v9 = vadd.f32 1.0, %v1811_v8 }
0x2aea   :  { %1812 = vrcp.f32 %v1300_v9  ;;  %v1312_v24 = vand.u32 2147483648, %v1300_v9  ;;  %vm1306_vm14 = vweird.f32 %v1300_v9  ;;  %v1310_v36 = vand.u32 2147483647, %v1300_v9 }
0x2aec   :  { %v1313_v26 = vor.u32 1.1754944e-38, %v1312_v24  ;;  %vm1311_vm0 = vcmp.eq.f32.partialorder %v1310_v36, 8.507059e+37 }
0x2af0   :  { %v1813_v10 = vpop.eup %1812 }
0x2af1   :  { %v1302_v12 = vmul.f32 %v1813_v10, %v1300_v9  ;;  %vm1307_vm13 = vweird.f32 %v1813_v10 }
0x2af2   :  { %vm1308_vm15 = vmor %vm1306_vm14, %vm1307_vm13 }
0x2af3   :  { %v1303_v15 = vsub.f32 1.0, %v1302_v12 }
0x2af5   :  { %v1304_v16 = vmul.f32 %v1813_v10, %v1303_v15 }
0x2af7   :  { %v1305_v23 = vadd.f32 %v1813_v10, %v1304_v16 }
0x2af9   :  { %v1309_v21 = vsel %vm1308_vm15, %v1813_v10, %v1305_v23 }
0x2afa   :  { %v1314_v5 = vsel %vm1311_vm0, %v1313_v26, %v1309_v21 }
0x2afb   :  { %v1317_v41 = vmul.f32 %v1314_v5, %v2385_v7 }
0x2b40   :  { %v1320_v27 = vpop.permute.xlu2 %1319 }
0x2b41   :  { %v1322_v11 = vmul.f32 %v1320_v27, %v1314_v5 }
0x2b43   :  { %1324 = vrot.lane.b32.xlu1 %v1322_v11, %s1871_s27 }
0x2bb5   :  { %v1325_v18 = vpop.permute.xlu1 %1324 }
0x2bb6   :  { %v2432_v52 = vadd.f32 %v1325_v18, %v1317_v41 }
0x2bb8   :  { %1814 = vtanh.f32 %v2432_v52 }
0x2bbe   :  { %v1815_v31 = vpop.eup %1814 }
0x2bbf   :  { %1330 = vrot.lane.b32.xlu0 %v1815_v31, %s1873_s12 }
0x2c31   :  { %v1331_v33 = vpop.permute.xlu0 %1330 }
0x2c32   :  { %v2436_v34 = vmul.f32 %v1331_v33, %v1314_v5 }
0x2c34   :  { %v1334_v49 = vpack.c.bf16 %v2436_v34, %v2436_v34 }
0x2c36   :  { %1336 = vrot.lane.b32.xlu2 %v1334_v49, %s1871_s27 }
0x2c90   :  { %v1337_v30 = vpop.permute.xlu2 %1336 }
0x2c91   :  { %1675 = vmatmul.msk.bf16.vlgmr.msrb.gmra.mxu3 %vm112_vm2, %v1337_v30 }
0x2d14   :  { %v1350_v7 = vpop.f32.mrf.mxu3 }
0x2d15   :  { %v1351_v38 = vadd.f32 %v2343_v4, %v1350_v7 }
0x2d17   :  { %v1356_v40 = vadd.f32 %v1676_v35, %v1351_v38 }
0x2d19   :  { %1357 = vmax.xlane.f32.xlu1 %v1356_v40 }
0x2d1c   :  { %v1352_v39 = vpop.f32.mrf.mxu3 }
0x2d32   :  { %1388 = vrot.lane.b32.xlu1 %v1270_v59, %s1873_s12 }
0x2d8c   :  { %v1358_v42 = vpop.xlane.xlu1 %1357 }
0x2d8d   :  { %vm1359_vm4 = vcmp.ge.f32.partialorder %v1356_v40, %v1358_v42 }
0x2d8e   :  { %v1360_v1 = vsel %vm1359_vm4, %v1974_v13, 128 }
0x2d8f   :  { %v1362_v56 = vshra.s32 %v1360_v1, 16  ;;  %v1361_v46 = vand.u32 65535, %v1360_v1 }
0x2d91   :  { %v1364_v54 = vcvt.s32.f32 %v1362_v56  ;;  %v1363_v43 = vcvt.s32.f32 %v1361_v46 }
0x2d93   :  { %1365 = vmin.xlane.f32.xlu0 %v1364_v54 }
0x2da4   :  { %v1389_v20 = vpop.permute.xlu1 %1388 }
0x2e06   :  { %v1366_v47 = vpop.xlane.xlu0 %1365 }
0x2e07   :  { %vm1367_vm5 = vcmp.eq.f32.partialorder %v1364_v54, %v1366_v47  ;;  %v1372_v45 = vcvt.f32.s32 %v1366_v47 }
0x2e08   :  { %v1368_v44 = vsel %vm1367_vm5, %v1363_v43, inf }
0x2e09   :  { %1369 = vmin.xlane.f32.xlu2 %v1368_v44  ;;  %v1373_v55 = vshll.u32 %v1372_v45, 16 }
0x2e7c   :  { %v1370_v48 = vpop.xlane.xlu2 %1369 }
0x2e7d   :  { %v1371_v58 = vcvt.f32.s32 %v1370_v48 }
0x2e7f   :  { %v1374_v25 = vadd.s32 %v1373_v55, %v1371_v58 }
0x2e81   :  { %vm1375_vm1 = vcmp.eq.s32.totalorder %v1374_v25, 2 }
0x2e82   :  { %v1376_v59 = vsel %vm1375_vm1, 1, %v1874_v50 }
0x2e83   :  { %vm1377_vm6 = vcmp.gt.s32.totalorder %v2405_v3, %v1376_v59 }
0x2e84   :  { %v2451_v60 = vsel %vm1377_vm6, %v2405_v3, %v1376_v59  ;;  %vm1558_vm6 = vcmp.eq.s32.totalorder %v1974_v13, 7 }
0x2e85   :  { %vm1379_vm8 = vcmp.gt.s32.totalorder %v2451_v60, 0 }
0x2e86   :  { %v1380_v61 = vsel %vm1379_vm8, 0, %v1374_v25  ;;  %vm1560_vm8 = vcmask 64512  }
0x2e87   :  { %vm1385_vm9 = vcmp.eq.s32.totalorder %v1974_v13, %v1380_v61  ;;  %v2457_v63 = vsel %vm1383_vm7, %v1380_v61, %v2409_v28 }
0x2e88   :  { %v1677_v62 = vsel %vm1385_vm9, 1.0, %v1872_v14  ;;  %vm1562_vm9 = vcmask 7168  }
0x2e89   :  { %v1391_v6 = vsel %vm112_vm2, %v1677_v62, %v1389_v20 }
0x2e8a   :  { %v1392_v2 = vpack.c.bf16 %v1391_v6, %v1391_v6 }
0x2e8c   :  { %1678 = vmatmul.msk.bf16.vlgmr.msrb.gmra.mxu1 %vm139_vm3, %v1392_v2 }
0x2f09   :  { %v1405_v17 = vpop.f32.mrf.mxu1 }
0x2f0a   :  { %v1406_v19 = vadd.f32 %v2280_v32, %v1405_v17 }
0x2f0c   :  { %1816 = vtanh.f32 %v1406_v19  ;;  %v1679_v10 = vmul.f32 -1.442695, %v1406_v19 }
0x2f0e   :  { %1818 = vpow2.f32 %v1679_v10 }
0x2f11   :  { %v1407_v8 = vpop.f32.mrf.mxu1 }
0x2f12   :  { %v1817_v9 = vpop.eup %1816 }
0x2f13   :  { %1431 = vrot.lane.b32.xlu0 %v1817_v9, %s1873_s12 }
0x2f14   :  { %v1819_v28 = vpop.eup %1818 }
0x2f15   :  { %v1412_v12 = vadd.f32 1.0, %v1819_v28  ;;  %v1683_v28 = vld [vmem:[%s2503_s1 + $0x38] sm:$0xff]  ;;  %s1875_s1 = smov [#allocation2]  }
0x2f17   :  { %1820 = vrcp.f32 %v1412_v12  ;;  %v1424_v36 = vand.u32 2147483648, %v1412_v12  ;;  %vm1418_vm11 = vweird.f32 %v1412_v12  ;;  %v1422_v21 = vand.u32 2147483647, %v1412_v12 }
0x2f19   :  { %v1425_v26 = vor.u32 1.1754944e-38, %v1424_v36  ;;  %vm1423_vm13 = vcmp.eq.f32.partialorder %v1422_v21, 8.507059e+37 }
0x2f1d   :  { %v1821_v15 = vpop.eup %1820 }
0x2f1e   :  { %v1414_v14 = vmul.f32 %v1821_v15, %v1412_v12  ;;  %vm1419_vm10 = vweird.f32 %v1821_v15 }
0x2f1f   :  { %vm1420_vm12 = vmor %vm1418_vm11, %vm1419_vm10 }
0x2f20   :  { %v1415_v16 = vsub.f32 1.0, %v1414_v14 }
0x2f22   :  { %v1416_v23 = vmul.f32 %v1821_v15, %v1415_v16 }
0x2f24   :  { %v1417_v24 = vadd.f32 %v1821_v15, %v1416_v23 }
0x2f26   :  { %v1421_v32 = vsel %vm1420_vm12, %v1821_v15, %v1417_v24 }
0x2f27   :  { %v1426_v5 = vsel %vm1423_vm13, %v1425_v26, %v1421_v32 }
0x2f28   :  { %v1429_v41 = vmul.f32 %v1426_v5, %v2419_v57 }
0x2f85   :  { %v1432_v27 = vpop.permute.xlu0 %1431 }
0x2f86   :  { %v1434_v11 = vmul.f32 %v1432_v27, %v1426_v5  ;;  %v507_v27 = vsub.s32 1, %v2150_v22  ;;  %v1381_v22 = vsub.s32 1, %v2451_v60 }
0x2f88   :  { %1436 = vrot.lane.b32.xlu2 %v1434_v11, %s1871_s27 }
0x2f90   :  { %1451 = vrot.lane.b32.xlu2 %v2436_v34, %s1873_s12 }
0x2fe2   :  { %v1437_v18 = vpop.permute.xlu2 %1436 }
0x2fe3   :  { %v1439_v31 = vadd.f32 %v1437_v18, %v1429_v41  ;;  %v856_v18 = vsub.s32 1, %v2265_v0 }
0x2fe5   :  { %1822 = vtanh.f32 %v1439_v31 }
0x2fea   :  { %v1452_v7 = vpop.permute.xlu2 %1451 }
0x2feb   :  { %v1823_v33 = vpop.eup %1822 }
0x2fec   :  { %1442 = vrot.lane.b32.xlu0 %v1823_v33, %s1873_s12 }
0x305e   :  { %v1443_v49 = vpop.permute.xlu0 %1442 }
0x305f   :  { %v1445_v30 = vmul.f32 %v1443_v49, %v1426_v5  ;;  %v681_v5 = vsub.s32 1, %v2208_v29  ;;  %v1031_v49 = vsub.s32 1, %v2353_v37 }
0x3061   :  { %1447 = vrot.lane.b32.xlu1 %v1445_v30, %s1871_s27 }
0x30d3   :  { %v1448_v35 = vpop.permute.xlu1 %1447 }
0x30d4   :  { %v1454_v38 = vsel %vm112_vm2, %v1448_v35, %v1452_v7 }
0x30d5   :  { %v1455_v40 = vpack.c.bf16 %v1454_v38, %v1454_v38  ;;  %v1206_v38 = vsub.s32 1, %v2405_v3 }
0x30d7   :  { %1680 = vmatmul.msk.bf16.vlgmr.msrb.gmra.mxu2 %vm139_vm3, %v1455_v40 }
0x315a   :  { %v1468_v34 = vpop.f32.mrf.mxu2 }
0x315b   :  { %v1469_v57 = vadd.f32 %v2313_v51, %v1468_v34 }
0x315d   :  { %1824 = vtanh.f32 %v1469_v57  ;;  %v1681_v1 = vmul.f32 -1.442695, %v1469_v57 }
0x315f   :  { %1826 = vpow2.f32 %v1681_v1 }
0x3162   :  { %v1470_v39 = vpop.f32.mrf.mxu2 }
0x3163   :  { %v1825_v42 = vpop.eup %1824 }
0x3164   :  { %1494 = vrot.lane.b32.xlu0 %v1825_v42, %s1873_s12 }
0x3165   :  { %v1827_v56 = vpop.eup %1826 }
0x3166   :  { %v1475_v54 = vadd.f32 1.0, %v1827_v56 }
0x3168   :  { %1828 = vrcp.f32 %v1475_v54  ;;  %v1487_v48 = vand.u32 2147483648, %v1475_v54  ;;  %vm1481_vm3 = vweird.f32 %v1475_v54  ;;  %v1485_v55 = vand.u32 2147483647, %v1475_v54 }
0x316a   :  { %v1488_v58 = vor.u32 1.1754944e-38, %v1487_v48  ;;  %vm1486_vm0 = vcmp.eq.f32.partialorder %v1485_v55, 8.507059e+37 }
0x316e   :  { %v1829_v46 = vpop.eup %1828 }
0x316f   :  { %v1477_v47 = vmul.f32 %v1829_v46, %v1475_v54  ;;  %vm1482_vm14 = vweird.f32 %v1829_v46 }
0x3170   :  { %vm1483_vm15 = vmor %vm1481_vm3, %vm1482_vm14 }
0x3171   :  { %v1478_v43 = vsub.f32 1.0, %v1477_v47 }
0x3173   :  { %v1479_v44 = vmul.f32 %v1829_v46, %v1478_v43 }
0x3175   :  { %v1480_v45 = vadd.f32 %v1829_v46, %v1479_v44 }
0x3177   :  { %v1484_v51 = vsel %vm1483_vm15, %v1829_v46, %v1480_v45 }
0x3178   :  { %v1489_v59 = vsel %vm1486_vm0, %v1488_v58, %v1484_v51 }
0x3179   :  { %v1492_v20 = vmul.f32 %v1489_v59, %v2432_v52 }
0x31d6   :  { %v1495_v25 = vpop.permute.xlu0 %1494 }
0x31d7   :  { %v1497_v61 = vmul.f32 %v1495_v25, %v1489_v59 }
0x31d9   :  { %1499 = vrot.lane.b32.xlu1 %v1497_v61, %s1871_s27 }
0x324b   :  { %v1500_v62 = vpop.permute.xlu1 %1499 }
0x324c   :  { %v1502_v6 = vadd.f32 %v1500_v62, %v1492_v20 }
0x324e   :  { %1830 = vtanh.f32 %v1502_v6 }
0x3254   :  { %v1831_v2 = vpop.eup %1830 }
0x3255   :  { %1505 = vrot.lane.b32.xlu2 %v1831_v2, %s1873_s12 }
0x32af   :  { %v1506_v17 = vpop.permute.xlu2 %1505 }
0x32b0   :  { %v1508_v19 = vmul.f32 %v1506_v17, %v1489_v59 }
0x32b2   :  { %v1509_v8 = vpack.c.bf16 %v1508_v19, %v1508_v19 }
0x32b4   :  { %1511 = vrot.lane.b32.xlu0 %v1509_v8, %s1871_s27  ;;  %s1569_s27 = sshll.u32 %s1875_s1, 4  ;;  %s1570_s27 = int_to_ptr.vmem [resolvable:$true] %s1569_s27 }
0x3326   :  { %v1512_v9 = vpop.permute.xlu0 %1511 }
0x3327   :  { %1682 = vmatmul.msk.bf16.vlgmr.msra.gmra.mxu0 %vm112_vm2, %v1512_v9 }
0x33a4   :  { %v1525_v10 = vpop.f32.mrf.mxu0 }
0x33a5   :  { %v1526_v52 = vadd.f32 %v2343_v4, %v1525_v10  ;;  %v333_v4 = vsub.s32 1, %v2097_v53 }
0x33a7   :  { %v1531_v12 = vadd.f32 %v1683_v28, %v1526_v52  ;;  %v508_v41 = vadd.s32 %v507_v27, %v333_v4 }
0x33a9   :  { %1532 = vmax.xlane.f32.xlu1 %v1531_v12  ;;  %v682_v33 = vadd.s32 %v681_v5, %v508_v41 }
0x33ab   :  { %v857_v35 = vadd.s32 %v856_v18, %v682_v33 }
0x33ac   :  { %v1527_v15 = vpop.f32.mrf.mxu0 }
0x33ad   :  { %v1032_v34 = vadd.s32 %v1031_v49, %v857_v35 }
0x33af   :  { %v1207_v29 = vadd.s32 %v1206_v38, %v1032_v34 }
0x33b1   :  { %v1382_v37 = vadd.s32 %v1381_v22, %v1207_v29 }
0x341c   :  { %v1533_v14 = vpop.xlane.xlu1 %1532 }
0x341d   :  { %vm1534_vm4 = vcmp.ge.f32.partialorder %v1531_v12, %v1533_v14 }
0x341e   :  { %v1535_v16 = vsel %vm1534_vm4, %v1974_v13, 128 }
0x341f   :  { %v1537_v23 = vshra.s32 %v1535_v16, 16  ;;  %v1536_v36 = vand.u32 65535, %v1535_v16 }
0x3421   :  { %v1539_v24 = vcvt.s32.f32 %v1537_v23  ;;  %v1538_v32 = vcvt.s32.f32 %v1536_v36 }
0x3423   :  { %1540 = vmin.xlane.f32.xlu2 %v1539_v24 }
0x3496   :  { %v1541_v21 = vpop.xlane.xlu2 %1540 }
0x3497   :  { %vm1542_vm2 = vcmp.eq.f32.partialorder %v1539_v24, %v1541_v21  ;;  %v1547_v11 = vcvt.f32.s32 %v1541_v21 }
0x3498   :  { %v1543_v26 = vsel %vm1542_vm2, %v1538_v32, inf }
0x3499   :  { %1544 = vmin.xlane.f32.xlu0 %v1543_v26  ;;  %v1548_v30 = vshll.u32 %v1547_v11, 16 }
0x350c   :  { %v1545_v31 = vpop.xlane.xlu0 %1544 }
0x350d   :  { %v1546_v7 = vcvt.f32.s32 %v1545_v31 }
0x350f   :  { %v1549_v40 = vadd.s32 %v1548_v30, %v1546_v7 }
0x3511   :  { %vm1550_vm5 = vcmp.eq.s32.totalorder %v1549_v40, 2 }
0x3512   :  { %v1551_v53 = vsel %vm1550_vm5, 1, %v1874_v50 }
0x3513   :  { %vm1552_vm1 = vcmp.gt.s32.totalorder %v2451_v60, %v1551_v53 }
0x3514   :  { %v1553_v0 = vsel %vm1552_vm1, %v2451_v60, %v1551_v53 }
0x3515   :  { %vm1554_vm7 = vcmp.gt.s32.totalorder %v1553_v0, 0  ;;  %v1556_v3 = vsub.s32 1, %v1553_v0 }
0x3516   :  { %v1555_v57 = vsel %vm1554_vm7, 0, %v1549_v40 }
0x3517   :  { %v1557_v50 = vadd.s32 %v1556_v3, %v1382_v37  ;;  %v1559_v39 = vsel %vm1558_vm6, %v1555_v57, %v2457_v63 }
0x3518   :  { %1561 = vst.msk [vmem:[#allocation2] sm:$0xff] %vm1560_vm8, %v1559_v39 }
0x3519   :  { %1563 = vst.msk [vmem:[%s2513_s11] sm:$0xff] %vm1562_vm9, %v1557_v50  ;;  %1574 = dma.vmem_to_hbm [thread:$0]  %s1570_s27, 128, %s1572_s0, [#allocation3]  }
0x351a   :  { %1869 = dma.done.wait [#allocation3], 128  }
0x351b   :  { %1870 = vsyncadd [#allocation3], 4294967168 }
0x351c   :  { %1583 = vsyncpa [#allocation3], 1 }

</bundles_post_ra>
